<compile_context>
chip_gen: v6e
topology: v6e:2x2x1
jax: 0.10.0
libtpu: 0.0.40
codegen_flags: <defaults>
</compile_context>

<pallas_src>
import jax
import jax.numpy as jnp
from jax.experimental import pallas as pl
from jax.experimental.pallas import tpu as pltpu


def _default_vmem_budget_bytes():
    """Per-generation VMEM budget used for tile sizing (also sets vmem_limit)."""
    try:
        kind = jax.devices()[0].device_kind.lower()
    except Exception:  # pragma: no cover - defensive
        kind = ""
    if "v5" in kind or "v6" in kind:
        return 80 * 1024 * 1024   # 128 MiB physical VMEM; leave Mosaic headroom
    return 40 * 1024 * 1024       # v7x (64 MiB / TensorCore) and unknown: conservative


def _choose_tiles(B, Ci, HW, n, itemsize, budget):
    """Pick (tb, tc, thw) block sizes and grid extents (nt, nhw)."""
    # Inputs dominate VMEM: n branches x 2 pipeline buffers x block bytes.
    input_budget = max(int(budget * 0.70), 2 * n * 128 * 128 * itemsize)
    per_block_limit = max(input_budget // (2 * n), 128 * 128 * itemsize)

    # Channel tile: full Ci, unless we need >=2 "parallel" grid steps to feed
    # both v7x TensorCores (B == 1) and Ci splits cleanly into 128-multiples.
    tc = Ci
    if B < 2 and Ci % 256 == 0:
        tc = Ci // 2

    # Spatial chunk: full HW when the (tc, HW) slab fits the budget; otherwise
    # chunk HW into lane-dense multiples of 128 (tail masked in-kernel).
    thw = HW
    if tc * HW * itemsize > per_block_limit:
        max_lanes = per_block_limit // (tc * itemsize)
        thw = min(HW, max(128, (max_lanes // 128) * 128))
        # Only if even a 128-lane chunk is too big, shrink tc (keep 128-mults).
        while tc * thw * itemsize > per_block_limit and tc % 256 == 0:
            tc //= 2

    nt = Ci // tc
    nhw = pl.cdiv(HW, thw)

    # Batch blocking: keep per-step DMA >= ~512 KiB / branch on small configs,
    # while keeping >= 2 total grid steps and staying inside the input budget.
    tb = 1
    per_branch = tc * thw * itemsize
    while (per_branch * tb < (512 << 10)
           and B % (tb * 2) == 0
           and (B // (tb * 2)) * nt * nhw >= 2
           and 2 * n * per_branch * (tb * 2) <= input_budget):
        tb *= 2
    return tb, tc, thw, nt, nhw


def _make_gap_kernel(n_branches, hw_total, thw):
    """Global-average-pool kernel body for one (batch, channel, hw-chunk) step."""
    needs_mask = (hw_total % thw) != 0
    inv_hw = 1.0 / float(hw_total)   # multiply-by-reciprocal (<=1 ulp vs true divide)

    def kernel(*refs):
        in_refs = refs[:n_branches]               # each (tb, tc, thw)
        o_ref = refs[n_branches]                  # (tb, n, tc)
        acc_refs = refs[n_branches + 1:]          # n x (tb, tc) f32 scratch
        h = pl.program_id(2)

        @pl.when(h == 0)
        def _init():
            for acc in acc_refs:
                acc[...] = jnp.zeros_like(acc)

        for k in range(n_branches):
            x = in_refs[k][...].astype(jnp.float32)               # (tb, tc, thw)
            if needs_mask:
                lane = jax.lax.broadcasted_iota(jnp.int32, x.shape, 2)
                x = jnp.where(lane + h * thw < hw_total, x, 0.0)
            # VPU partial adds + one XLU cross-lane reduce per channel tile.
            acc_refs[k][...] += jnp.sum(x, axis=-1)               # (tb, tc)

        @pl.when(h == pl.num_programs(2) - 1)
        def _finalize():
            for k in range(n_branches):
                mean = acc_refs[k][...] * inv_hw                  # (tb, tc) f32
                o_ref[:, k:k + 1, :] = mean[:, None, :].astype(o_ref.dtype)

    return kernel


def fusion_neck_forward(branches, *, vmem_budget_bytes=None):
    """branches: tuple of NCHW arrays [B, Ci, H, W] (same shape) -> [B, n*Ci]."""
    branches = tuple(branches)
    n = len(branches)
    B, Ci, H, W = branches[0].shape
    for br in branches:
        assert br.shape == (B, Ci, H, W), "all branches must share [B, Ci, H, W]"
    HW = H * W
    # Note: torch.cat would reject mixed dtypes; we promote like jnp.result_type.
    out_dtype = jnp.result_type(*[br.dtype for br in branches])
    itemsize = max(jnp.dtype(br.dtype).itemsize for br in branches)

    if vmem_budget_bytes is None:
        vmem_budget_bytes = _default_vmem_budget_bytes()

    tb, tc, thw, nt, nhw = _choose_tiles(B, Ci, HW, n, itemsize, vmem_budget_bytes)

    # Cheap metadata reshape NCHW -> NC(HW); no data movement.
    flat = [br.reshape(B, Ci, HW) for br in branches]

    in_specs = [pl.BlockSpec((tb, tc, thw), lambda b, t, h: (b, t, h))
                for _ in range(n)]
    out_spec = pl.BlockSpec((tb, n, tc), lambda b, t, h: (b, 0, t))
    out_shape = jax.ShapeDtypeStruct((B, n, Ci), out_dtype)

    bytes_in = sum(br.size * jnp.dtype(br.dtype).itemsize for br in branches)
    bytes_out = B * n * Ci * jnp.dtype(out_dtype).itemsize
    cost = pl.CostEstimate(
        flops=n * B * Ci * HW,
        transcendentals=0,
        bytes_accessed=bytes_in + bytes_out,
    )

    pooled = pl.pallas_call(
        _make_gap_kernel(n, HW, thw),
        out_shape=out_shape,
        grid=(B // tb, nt, nhw),
        in_specs=in_specs,
        out_specs=out_spec,
        scratch_shapes=[pltpu.VMEM((tb, tc), jnp.float32) for _ in range(n)],
        compiler_params=pltpu.CompilerParams(
            dimension_semantics=("parallel", "parallel", "arbitrary"),
            vmem_limit_bytes=int(vmem_budget_bytes) + (2 << 20),
        ),
        cost_estimate=cost,
    )(*flat)

    # fusion_layer is Identity (no-op). (B, n, Ci) -> (B, n*Ci) is a tiny
    # metadata reshape whose channel order matches torch.cat(x, dim=1).
    return pooled.reshape(B, n * Ci)


if __name__ == "__main__":
    # Synthetic config: rgb + freq + noise branches enabled (3 branches).
    # Small shapes: B=2, 128 channels per branch (512 in the real module),
    # 16x16 spatial. No learnable parameters (fusion_layer is Identity).
    key = jax.random.PRNGKey(0)
    B, C_branch, H, W = 2, 128, 16, 16
    k1, k2, k3 = jax.random.split(key, 3)
    rgb_feat = jax.random.normal(k1, (B, C_branch, H, W), dtype=jnp.float32)
    freq_feat = jax.random.normal(k2, (B, C_branch, H, W), dtype=jnp.float32)
    noise_feat = jax.random.normal(k3, (B, C_branch, H, W), dtype=jnp.float32)

    feat = fusion_neck_forward((rgb_feat, freq_feat, noise_feat))
    feat = jax.block_until_ready(feat)

    # Reference check (pure JAX): concat -> mean over H,W -> flatten.
    ref = jnp.concatenate((rgb_feat, freq_feat, noise_feat), axis=1).mean(axis=(2, 3))
    assert feat.shape == (B, 3 * C_branch)
    assert feat.dtype == ref.dtype
    assert jnp.allclose(feat, ref, atol=1e-5, rtol=1e-5)

    # Second check: force the HW-reduction grid axis + tail masking path
    # (non-128-multiple H*W, tiny VMEM budget -> 128-lane chunks, 3 hw steps).
    H2, W2 = 18, 18
    k4, k5, k6 = jax.random.split(jax.random.PRNGKey(1), 3)
    b2 = (jax.random.normal(k4, (B, C_branch, H2, W2), dtype=jnp.float32),
          jax.random.normal(k5, (B, C_branch, H2, W2), dtype=jnp.float32),
          jax.random.normal(k6, (B, C_branch, H2, W2), dtype=jnp.float32))
    feat2 = jax.block_until_ready(
        fusion_neck_forward(b2, vmem_budget_bytes=1 * 1024 * 1024))
    ref2 = jnp.concatenate(b2, axis=1).mean(axis=(2, 3))
    assert feat2.shape == (B, 3 * C_branch)
    assert jnp.allclose(feat2, ref2, atol=1e-5, rtol=1e-5)

    print("KERNEL_OK")
</pallas_src>

<mosaic_0001>
module attributes {stable_mosaic.version = 11 : i64} {
  func.func @kernel(%arg0: i32, %arg1: i32, %arg2: i32, %arg3: memref<1x128x256xf32, #tpu.memory_space<vmem>>, %arg4: memref<1x128x256xf32, #tpu.memory_space<vmem>>, %arg5: memref<1x128x256xf32, #tpu.memory_space<vmem>>, %arg6: memref<1x3x128xf32, #tpu.memory_space<vmem>>, %arg7: memref<1x128xf32, #tpu.memory_space<vmem>>, %arg8: memref<1x128xf32, #tpu.memory_space<vmem>>, %arg9: memref<1x128xf32, #tpu.memory_space<vmem>>) attributes {dimension_semantics = [#tpu.dimension_semantics<parallel>, #tpu.dimension_semantics<parallel>, #tpu.dimension_semantics<arbitrary>], iteration_bounds = array<i64: 2, 1, 1>, scalar_prefetch = 0 : i64, scratch_operands = 3 : i64, tpu.core_type = #tpu.core_type<tc>, window_params = [{transform_indices = @transform_0, window_bounds = array<i64: 1, 128, 256>}, {transform_indices = @transform_1, window_bounds = array<i64: 1, 128, 256>}, {transform_indices = @transform_2, window_bounds = array<i64: 1, 128, 256>}, {transform_indices = @transform_3, window_bounds = array<i64: 1, 3, 128>}]} {
    %c0_i32 = arith.constant 0 : i32
    %0 = arith.cmpi eq, %arg2, %c0_i32 : i32
    %1 = arith.extui %0 : i1 to i32
    %c0_i32_0 = arith.constant 0 : i32
    %2 = arith.cmpi ne, %1, %c0_i32_0 : i32
    scf.if %2 {
      %cst_25 = arith.constant 0.000000e+00 : f32
      %21 = vector.broadcast %cst_25 : f32 to vector<1x128xf32>
      %c0_26 = arith.constant 0 : index
      %c0_27 = arith.constant 0 : index
      %22 = vector.load %arg7[%c0_26, %c0_27] : memref<1x128xf32, #tpu.memory_space<vmem>>, vector<1x128xf32>
      tpu.vector_store %arg7[%c0_26, %c0_27], %21 {strides = array<i32>} : memref<1x128xf32, #tpu.memory_space<vmem>>, vector<1x128xf32>,
      %cst_28 = arith.constant 0.000000e+00 : f32
      %23 = vector.broadcast %cst_28 : f32 to vector<1x128xf32>
      %c0_29 = arith.constant 0 : index
      %c0_30 = arith.constant 0 : index
      %24 = vector.load %arg8[%c0_29, %c0_30] : memref<1x128xf32, #tpu.memory_space<vmem>>, vector<1x128xf32>
      tpu.vector_store %arg8[%c0_29, %c0_30], %23 {strides = array<i32>} : memref<1x128xf32, #tpu.memory_space<vmem>>, vector<1x128xf32>,
      %cst_31 = arith.constant 0.000000e+00 : f32
      %25 = vector.broadcast %cst_31 : f32 to vector<1x128xf32>
      %c0_32 = arith.constant 0 : index
      %c0_33 = arith.constant 0 : index
      %26 = vector.load %arg9[%c0_32, %c0_33] : memref<1x128xf32, #tpu.memory_space<vmem>>, vector<1x128xf32>
      tpu.vector_store %arg9[%c0_32, %c0_33], %25 {strides = array<i32>} : memref<1x128xf32, #tpu.memory_space<vmem>>, vector<1x128xf32>,
    } else {
    }
    %c0 = arith.constant 0 : index
    %c0_1 = arith.constant 0 : index
    %c0_2 = arith.constant 0 : index
    %3 = vector.load %arg3[%c0, %c0_1, %c0_2] : memref<1x128x256xf32, #tpu.memory_space<vmem>>, vector<1x128x256xf32>
    %c0_3 = arith.constant 0 : index
    %c0_4 = arith.constant 0 : index
    %4 = vector.load %arg7[%c0_3, %c0_4] : memref<1x128xf32, #tpu.memory_space<vmem>>, vector<1x128xf32>
    %cst = arith.constant dense<0.000000e+00> : vector<1x128xf32>
    %5 = vector.multi_reduction <add>, %3, %cst [2] : vector<1x128x256xf32> to vector<1x128xf32>
    %6 = arith.addf %4, %5 : vector<1x128xf32>
    %c0_5 = arith.constant 0 : index
    %c0_6 = arith.constant 0 : index
    %7 = vector.load %arg7[%c0_5, %c0_6] : memref<1x128xf32, #tpu.memory_space<vmem>>, vector<1x128xf32>
    tpu.vector_store %arg7[%c0_5, %c0_6], %6 {strides = array<i32>} : memref<1x128xf32, #tpu.memory_space<vmem>>, vector<1x128xf32>,
    %c0_7 = arith.constant 0 : index
    %c0_8 = arith.constant 0 : index
    %c0_9 = arith.constant 0 : index
    %8 = vector.load %arg4[%c0_7, %c0_8, %c0_9] : memref<1x128x256xf32, #tpu.memory_space<vmem>>, vector<1x128x256xf32>
    %c0_10 = arith.constant 0 : index
    %c0_11 = arith.constant 0 : index
    %9 = vector.load %arg8[%c0_10, %c0_11] : memref<1x128xf32, #tpu.memory_space<vmem>>, vector<1x128xf32>
    %cst_12 = arith.constant dense<0.000000e+00> : vector<1x128xf32>
    %10 = vector.multi_reduction <add>, %8, %cst_12 [2] : vector<1x128x256xf32> to vector<1x128xf32>
    %11 = arith.addf %9, %10 : vector<1x128xf32>
    %c0_13 = arith.constant 0 : index
    %c0_14 = arith.constant 0 : index
    %12 = vector.load %arg8[%c0_13, %c0_14] : memref<1x128xf32, #tpu.memory_space<vmem>>, vector<1x128xf32>
    tpu.vector_store %arg8[%c0_13, %c0_14], %11 {strides = array<i32>} : memref<1x128xf32, #tpu.memory_space<vmem>>, vector<1x128xf32>,
    %c0_15 = arith.constant 0 : index
    %c0_16 = arith.constant 0 : index
    %c0_17 = arith.constant 0 : index
    %13 = vector.load %arg5[%c0_15, %c0_16, %c0_17] : memref<1x128x256xf32, #tpu.memory_space<vmem>>, vector<1x128x256xf32>
    %c0_18 = arith.constant 0 : index
    %c0_19 = arith.constant 0 : index
    %14 = vector.load %arg9[%c0_18, %c0_19] : memref<1x128xf32, #tpu.memory_space<vmem>>, vector<1x128xf32>
    %cst_20 = arith.constant dense<0.000000e+00> : vector<1x128xf32>
    %15 = vector.multi_reduction <add>, %13, %cst_20 [2] : vector<1x128x256xf32> to vector<1x128xf32>
    %16 = arith.addf %14, %15 : vector<1x128xf32>
    %c0_21 = arith.constant 0 : index
    %c0_22 = arith.constant 0 : index
    %17 = vector.load %arg9[%c0_21, %c0_22] : memref<1x128xf32, #tpu.memory_space<vmem>>, vector<1x128xf32>
    tpu.vector_store %arg9[%c0_21, %c0_22], %16 {strides = array<i32>} : memref<1x128xf32, #tpu.memory_space<vmem>>, vector<1x128xf32>,
    %c0_i32_23 = arith.constant 0 : i32
    %18 = arith.cmpi eq, %arg2, %c0_i32_23 : i32
    %19 = arith.extui %18 : i1 to i32
    %c0_i32_24 = arith.constant 0 : i32
    %20 = arith.cmpi ne, %19, %c0_i32_24 : i32
    scf.if %20 {
      %c0_25 = arith.constant 0 : index
      %c0_26 = arith.constant 0 : index
      %21 = vector.load %arg7[%c0_25, %c0_26] : memref<1x128xf32, #tpu.memory_space<vmem>>, vector<1x128xf32>
      %cst_27 = arith.constant 3.906250e-03 : f32
      %22 = vector.broadcast %cst_27 : f32 to vector<1x128xf32>
      %23 = arith.mulf %21, %22 : vector<1x128xf32>
      %24 = vector.shape_cast %23 : vector<1x128xf32> to vector<1x1x128xf32>
      %c0_28 = arith.constant 0 : index
      %c0_29 = arith.constant 0 : index
      %c0_30 = arith.constant 0 : index
      %25 = vector.load %arg6[%c0_28, %c0_29, %c0_30] : memref<1x3x128xf32, #tpu.memory_space<vmem>>, vector<1x1x128xf32>
      tpu.vector_store %arg6[%c0_28, %c0_29, %c0_30], %24 {strides = array<i32>} : memref<1x3x128xf32, #tpu.memory_space<vmem>>, vector<1x1x128xf32>,
      %c0_31 = arith.constant 0 : index
      %c0_32 = arith.constant 0 : index
      %26 = vector.load %arg8[%c0_31, %c0_32] : memref<1x128xf32, #tpu.memory_space<vmem>>, vector<1x128xf32>
      %cst_33 = arith.constant 3.906250e-03 : f32
      %27 = vector.broadcast %cst_33 : f32 to vector<1x128xf32>
      %28 = arith.mulf %26, %27 : vector<1x128xf32>
      %29 = vector.shape_cast %28 : vector<1x128xf32> to vector<1x1x128xf32>
      %c0_34 = arith.constant 0 : index
      %c1 = arith.constant 1 : index
      %c0_35 = arith.constant 0 : index
      %30 = vector.load %arg6[%c0_34, %c1, %c0_35] : memref<1x3x128xf32, #tpu.memory_space<vmem>>, vector<1x1x128xf32>
      tpu.vector_store %arg6[%c0_34, %c1, %c0_35], %29 {strides = array<i32>} : memref<1x3x128xf32, #tpu.memory_space<vmem>>, vector<1x1x128xf32>,
      %c0_36 = arith.constant 0 : index
      %c0_37 = arith.constant 0 : index
      %31 = vector.load %arg9[%c0_36, %c0_37] : memref<1x128xf32, #tpu.memory_space<vmem>>, vector<1x128xf32>
      %cst_38 = arith.constant 3.906250e-03 : f32
      %32 = vector.broadcast %cst_38 : f32 to vector<1x128xf32>
      %33 = arith.mulf %31, %32 : vector<1x128xf32>
      %34 = vector.shape_cast %33 : vector<1x128xf32> to vector<1x1x128xf32>
      %c0_39 = arith.constant 0 : index
      %c2 = arith.constant 2 : index
      %c0_40 = arith.constant 0 : index
      %35 = vector.load %arg6[%c0_39, %c2, %c0_40] : memref<1x3x128xf32, #tpu.memory_space<vmem>>, vector<1x1x128xf32>
      tpu.vector_store %arg6[%c0_39, %c2, %c0_40], %34 {strides = array<i32>} : memref<1x3x128xf32, #tpu.memory_space<vmem>>, vector<1x1x128xf32>,
    } else {
    }
    return
  }
  func.func @transform_0(%arg0: i32, %arg1: i32, %arg2: i32) -> (i32, i32, i32) {
    %c0_i32 = arith.constant 0 : i32
    return %arg0, %arg1, %arg2 : i32, i32, i32
  }
  func.func @transform_1(%arg0: i32, %arg1: i32, %arg2: i32) -> (i32, i32, i32) {
    %c0_i32 = arith.constant 0 : i32
    return %arg0, %arg1, %arg2 : i32, i32, i32
  }
  func.func @transform_2(%arg0: i32, %arg1: i32, %arg2: i32) -> (i32, i32, i32) {
    %c0_i32 = arith.constant 0 : i32
    return %arg0, %arg1, %arg2 : i32, i32, i32
  }
  func.func @transform_3(%arg0: i32, %arg1: i32, %arg2: i32) -> (i32, i32, i32) {
    %c0_i32 = arith.constant 0 : i32
    %c0_i32_0 = arith.constant 0 : i32
    return %arg0, %c0_i32, %arg1 : i32, i32, i32
  }
}

</mosaic_0001>

<bundles_post_ra>
// kernel: tpu_custom_call.1
= control target key start
LH: loop header
LB: loop body
LE: loop exit
PB: predicated region body
PF: predicated region fallthrough
CT: control target
= control target key end

     0   :  { %8 = vsyncpa [#allocation6], 0  ;;  %s6834_s0 = inlined_call_operand.hbm [shape: f32[2,128,256], index: 0, kind: input, shape index: {}]   ;;  %s6835_s1 = inlined_call_operand.hbm [shape: f32[2,128,256], index: 1, kind: input, shape index: {}]   ;;  %s6836_s2 = inlined_call_operand.hbm [shape: f32[2,128,256], index: 2, kind: input, shape index: {}]   ;;  %s6837_s3 = inlined_call_operand.vmem [shape: f32[2,3,128], index: 3, kind: output, shape index: {}]  }
   0x1   :  { %10 = vsyncpa [#allocation6 + $0x1], 0 }
   0x2   :  { %11 = vsyncpa [#allocation8], 0 }
   0x3   :  { %13 = vsyncpa [#allocation8 + $0x1], 0  ;;  %s5395_s12 = smov 0   ;;  %s5397_s13 = smov 0  }
   0x4   :  { %s5399_s14 = smov 0   ;;  %s5401_s15 = smov 0  }
   0x5   :  { %s5403_s16 = smov 0   ;;  %s5405_s17 = smov 0  }
   0x6 LB: > { %s6838_s18 = sadd.s32 4294967295, %s5365_s17   ;;  %s38_s19 = sadd.s32 1, %s5361_s16  ;;  %s5365_s17 = sphi %s5405_s17, %s19_s17   ;;  %s5361_s16 = sphi %s5403_s16, %s6847_s16   ;;  %s5357_s15 = sphi %s5401_s15, %s6846_s15   ;;  %s5353_s14 = sphi %s5399_s14, %s6845_s14   ;;  %s5349_s13 = sphi %s5397_s13, %s6844_s13   ;;  %s5345_s12 = sphi %s5395_s12, %s6843_s12  }
   0x7   : > { %p40_p0 = scmp.ge.s32.totalorder %s38_s19, 2  ;;  %s49_s20 = sadd.s32 1, %s5353_s14 }
   0x8   : > { %p56_p1 = scmp.ne.s32.totalorder %s5353_s14, %s5349_s13  ;;  %p57_p2 = scmp.eq.s32.totalorder %s5365_s17, 0 }
   0x9   : > { %s6849_s19 = smov (%p40_p0, %s38_s19), 0  ;;  %p62_p4 = scmp.ne.s32.totalorder %s5349_s13, %s5345_s12 }
   0xa   : > { %p58_p3 = por %p57_p2, %p56_p1  ;;  %s42_s21 = ssub.s32 %s5361_s16, %s6849_s19 }
   0xb   : > { %p63_p5 = scmp.eq.s32.totalorder %s6838_s18, 0  ;;  %p47_p6 = scmp.eq.s32.totalorder %s42_s21, 0 }
   0xc   : > { %p5171_p8 = scmp.lt.s32.totalorder %s5365_s17, 2  ;;  %s174_s24 = sand.u32 1, %s5353_s14  }
   0xd   : > { %p5436_p7 = por %p63_p5, %p62_p4  ;;  %s5446_s25 = sshll.u32 %s5361_s16, 12 }
   0xe   : > { %s5442_s23 = scalar_select %p47_p6, %s5353_s14, %s49_s20  }
   0xf   : > { %s5450_s26 = sshll.u32 %s174_s24, 8  ;;  %p5452_p9 = pnand %p5171_p8, %p58_p3 }
  0x10   : > { %s200_s28 = sand.u32 1, %s5365_s17   ;;  %s215_s4 = scalar_lea.hbm %s6835_s1, %s5446_s25 }
  0x11   : > { %s204_s5 = scalar_lea.vmem [#allocation7], %s5450_s26  ;;  %p5145_p10 = scmp.ge.s32.totalorder %s5365_s17, 1 }
  0x12   : > { %s216_s6 = sshll.u32 %s204_s5, 4  ;;  %s5463_s7 = scalar_lea.sflag [#allocation8], %s200_s28  ;;  %s217_s6 = int_to_ptr.vmem [resolvable:$true] %s216_s6 }
  0x13   : > { %p5229_p11 = pneg %p5452_p9  ;;  %s5240_s8 = scalar_lea.vmem %s217_s6, 4096 }
  0x14   : > { %p5241_p12 = scmp.ne.s32.totalorder %s217_s6, %s5240_s8  ;;  %s5367_s9 = smov [#allocation7]  }
  0x15   : > { %s5245_s10 = sshll.u32 %s5367_s9, 4  ;;  %s5246_s10 = int_to_ptr.vmem [resolvable:$false] %s5245_s10 }
  0x16   : > { %p5243_p13 = pnand %p5241_p12, %p5229_p11  ;;  %s5247_s11 = scalar_lea.vmem %s5246_s10, 8192 }
  0x17   : > { %p5248_p1 = scmp.lt.s32.totalorder %s217_s6, %s5246_s10  ;;  %p5249_p2 = scmp.lt.s32.totalorder %s5247_s11, %s5240_s8 }
  0x18   : > { %p5244_p0 = pneg %p5243_p13 }
  0x19   : > { %p5250_p3 = por %p5249_p2, %p5248_p1 }
  0x1b   : > { %p5251_p4 = pnand %p5250_p3, %p5244_p0 }
  0x1d   : > { %5254 = shalt.err (!%p5251_p4)
}
  0x1e   : > { %s5368_s12 = smov 256   ;;  %s5369_s20 = smov 16  }
  0x1f   : > { %5167 = dma.hbm_to_vmem [thread:$0]  (!%p5452_p9), %s215_s4, 4096, %s217_s6, %s5463_s7, %s5368_s12, %s5368_s12, %s5369_s20  }
  0x20   : > { %p250_p5 = scmp.lt.s32.totalorder %s5365_s17, 3  ;;  %s189_s30 = scalar_lea.hbm %s6834_s0, %s5446_s25 }
  0x21   : > { %s178_s5 = scalar_lea.vmem [#allocation5], %s5450_s26  ;;  %s175_s9 = scalar_lea.sflag [#allocation6], %s174_s24 }
  0x22   : > { %p5479_p6 = pnand %p5145_p10, %p250_p5  ;;  %s190_s8 = sshll.u32 %s178_s5, 4  ;;  %s191_s8 = int_to_ptr.vmem [resolvable:$true] %s190_s8 }
  0x23   : > { %s5268_s10 = scalar_lea.vmem %s191_s8, 4096  ;;  %s5370_s4 = smov [#allocation5]  }
  0x24   : > { %p5269_p8 = scmp.ne.s32.totalorder %s191_s8, %s5268_s10  ;;  %s5273_s6 = sshll.u32 %s5370_s4, 4  ;;  %s5274_s6 = int_to_ptr.vmem [resolvable:$false] %s5273_s6 }
  0x25   : > { %s5275_s11 = scalar_lea.vmem %s5274_s6, 8192  ;;  %p5276_p10 = scmp.lt.s32.totalorder %s191_s8, %s5274_s6 }
  0x26   : > { %p5271_p12 = pnand %p5269_p8, %p5229_p11  ;;  %p5277_p0 = scmp.lt.s32.totalorder %s5275_s11, %s5268_s10 }
  0x28   : > { %p5272_p13 = pneg %p5271_p12  ;;  %p5278_p1 = por %p5277_p0, %p5276_p10 }
  0x2a   : > { %p5279_p2 = pnand %p5278_p1, %p5272_p13 }
  0x2c   : > { %5282 = shalt.err (!%p5279_p2)
}
  0x2d   : > { %5164 = dma.hbm_to_vmem [thread:$0]  (!%p5452_p9), %s189_s30, 4096, %s191_s8, %s175_s9, %s5368_s12, %s5368_s12, %s5369_s20  }
  0x2e   : > { %s241_s29 = scalar_lea.hbm %s6836_s2, %s5446_s25  ;;  %s230_s5 = scalar_lea.vmem [#allocation9], %s5450_s26 }
  0x2f   : > { %s242_s4 = sshll.u32 %s230_s5, 4  ;;  %s5371_s6 = smov [#allocation9]   ;;  %s243_s4 = int_to_ptr.vmem [resolvable:$true] %s242_s4 }
  0x30   : > { %s5296_s10 = scalar_lea.vmem %s243_s4, 4096  ;;  %s5301_s11 = sshll.u32 %s5371_s6, 4  ;;  %s5302_s11 = int_to_ptr.vmem [resolvable:$false] %s5301_s11 }
  0x31   : > { %p5297_p3 = scmp.ne.s32.totalorder %s243_s4, %s5296_s10  ;;  %s5303_s18 = scalar_lea.vmem %s5302_s11, 8192 }
  0x32   : > { %p5304_p8 = scmp.lt.s32.totalorder %s243_s4, %s5302_s11  ;;  %p5305_p12 = scmp.lt.s32.totalorder %s5303_s18, %s5296_s10 }
  0x33   : > { %p5299_p4 = pnand %p5297_p3, %p5229_p11 }
  0x34   : > { %p5306_p13 = por %p5305_p12, %p5304_p8 }
  0x35   : > { %p5300_p5 = pneg %p5299_p4 }
  0x37   : > { %p5307_p10 = pnand %p5306_p13, %p5300_p5 }
  0x39   : > { %5310 = shalt.err (!%p5307_p10)
}
  0x3a   : > { %5170 = dma.hbm_to_vmem [thread:$0]  (!%p5452_p9), %s241_s29, 4096, %s243_s4, %s5463_s7, %s5368_s12, %s5368_s12, %s5369_s20  }
  0x3b   : > { %254 = sbr.rel (%p5479_p6) target bundleno = 613 (0x265), region = 32  ;;  %s256_s25 = sand.u32 (!%p5479_p6), 1, %s5349_s13  }
  0x3c   : > { %s5515_s26 = sshll.u32 (!%p5479_p6), %s256_s25, 8  ;;  %s257_s18 = scalar_lea.sflag (!%p5479_p6), [#allocation6], %s256_s25 }
  0x3d   : > { %s5518_s30 = scalar_lea.vmem (!%p5479_p6), [#allocation5], %s5515_s26 }
  0x40   : > { %5336 = dma.done.wait (%p5436_p7), %s257_s18, 4096  }
  0x41   : > { %5338 = vsyncadd (%p5436_p7), %s257_s18, 4294963200  ;;  %s6842_s27 = sadd.s32 4294967295, %s5365_s17   ;;  %s5527_s20 = scalar_lea.vmem [#allocation7], %s5515_s26 }
  0x42   : > { %s265_s7 = sand.u32 1, %s6842_s27  }
  0x43   : > { %s266_s12 = scalar_lea.sflag [#allocation8], %s265_s7 }
  0x44   : > { %5340 = dma.done.wait (%p5436_p7), %s266_s12, 8192  }
  0x45   : > { %5342 = vsyncadd (%p5436_p7), %s266_s12, 4294959104  ;;  %v337_v0 = vld [vmem:[%s5518_s30 + $0x20] sm:$0xff]  ;;  %v338_v1 = vld [vmem:[%s5518_s30 + $0x28] sm:$0xff]  ;;  %v5372_v40 = vmov 0   ;;  %s5598_s22 = scalar_lea.vmem [#allocation9], %s5515_s26  ;;  %vm1785_vm0 = vcmask 130112  }
  0x46   : > { %v333_v2 = vld [vmem:[%s5518_s30] sm:$0xff]  ;;  %v372_v3 = vadd.f32 %v338_v1, %v337_v0  ;;  %v334_v4 = vld [vmem:[%s5518_s30 + $0x8] sm:$0xff]  ;;  %v339_v5 = vld [vmem:[%s5518_s30 + $0x30] sm:$0xff]  ;;  %5225 = vset.pattern.permute.xlu0 %v5372_v40  ;;  %5226 = vset.pattern.permute.xlu1 %v5372_v40  ;;  %vm1792_vm1 = vcmask 195712   ;;  %vm1799_vm2 = vcmask 261312   ;;  %vm1806_vm3 = vcmask 326912  }
  0x47   : > { %v340_v6 = vld [vmem:[%s5518_s30 + $0x38] sm:$0xff]  ;;  %v366_v7 = vadd.f32 %v334_v4, %v333_v2  ;;  %v335_v8 = vld [vmem:[%s5518_s30 + $0x10] sm:$0xff]  ;;  %v341_v14 = vld [vmem:[%s5518_s30 + $0x40] sm:$0xff]  ;;  %vm1813_vm4 = vcmask 392512   ;;  %vm1820_vm5 = vcmask 458112   ;;  %vm1827_vm6 = vcmask 523712  }
  0x48   : > { %v336_v9 = vld [vmem:[%s5518_s30 + $0x18] sm:$0xff]  ;;  %373 = vadd.xlane.f32.xlu1 %v372_v3  ;;  %v375_v10 = vadd.f32 %v340_v6, %v339_v5  ;;  %v343_v12 = vld [vmem:[%s5518_s30 + $0x50] sm:$0xff]  ;;  %v342_v15 = vld [vmem:[%s5518_s30 + $0x48] sm:$0xff]  ;;  %vm1834_vm7 = vcmask 589312   ;;  %vm1841_vm8 = vcmask 654912   ;;  %vm1848_vm9 = vcmask 720512  }
  0x49   : > { %367 = vadd.xlane.f32.xlu0 %v366_v7  ;;  %v369_v11 = vadd.f32 %v336_v9, %v335_v8  ;;  %v344_v13 = vld [vmem:[%s5518_s30 + $0x58] sm:$0xff]  ;;  %v378_v17 = vadd.f32 %v342_v15, %v341_v14  ;;  %v347_v18 = vld [vmem:[%s5518_s30 + $0x70] sm:$0xff]  ;;  %v345_v20 = vld [vmem:[%s5518_s30 + $0x60] sm:$0xff]  ;;  %vm1855_vm10 = vcmask 786112   ;;  %vm1862_vm11 = vcmask 851712   ;;  %p319_p7 = scmp.lt.s32.totalorder %s5357_s15, 1 }
  0x4a   : > { %v381_v16 = vadd.f32 %v344_v13, %v343_v12  ;;  %v348_v19 = vld [vmem:[%s5518_s30 + $0x78] sm:$0xff]  ;;  %v346_v21 = vld [vmem:[%s5518_s30 + $0x68] sm:$0xff]  ;;  %v351_v24 = vld [vmem:[%s5518_s30 + $0x90] sm:$0xff]  ;;  %vm1869_vm12 = vcmask 917312   ;;  %vm1876_vm13 = vcmask 982912   ;;  %vm1883_vm14 = vcmask 1048512  }
  0x4b   : > { %v387_v22 = vadd.f32 %v348_v19, %v347_v18  ;;  %v384_v23 = vadd.f32 %v346_v21, %v345_v20  ;;  %v352_v25 = vld [vmem:[%s5518_s30 + $0x98] sm:$0xff]  ;;  %v349_v26 = vld [vmem:[%s5518_s30 + $0x80] sm:$0xff]  ;;  %v350_v27 = vld [vmem:[%s5518_s30 + $0x88] sm:$0xff]  ;;  %s6851_s15 = smov (!%p319_p7, %s5357_s15), 1 }
  0x4c   : > { %376 = vadd.xlane.f32.xlu1 %v375_v10  ;;  %v393_v28 = vadd.f32 %v352_v25, %v351_v24  ;;  %v390_v29 = vadd.f32 %v350_v27, %v349_v26  ;;  %v355_v30 = vld [vmem:[%s5518_s30 + $0xb0] sm:$0xff]  ;;  %v356_v31 = vld [vmem:[%s5518_s30 + $0xb8] sm:$0xff]  ;;  %v353_v32 = vld [vmem:[%s5518_s30 + $0xa0] sm:$0xff]  ;;  %s5149_s21 = sshll.u32 %s6851_s15, 2 }
  0x4d   : > { %370 = vadd.xlane.f32.xlu0 %v369_v11  ;;  %v354_v33 = vld [vmem:[%s5518_s30 + $0xa8] sm:$0xff]  ;;  %v399_v34 = vadd.f32 %v356_v31, %v355_v30  ;;  %v359_v36 = vld [vmem:[%s5518_s30 + $0xd0] sm:$0xff]  ;;  %v360_v37 = vld [vmem:[%s5518_s30 + $0xd8] sm:$0xff]  ;;  %s6769_s24 = scalar_lea.vmem %s6837_s3, %s5149_s21 }
  0x4e   : > { %v396_v35 = vadd.f32 %v354_v33, %v353_v32  ;;  %v357_v38 = vld [vmem:[%s5518_s30 + $0xc0] sm:$0xff]  ;;  %v358_v39 = vld [vmem:[%s5518_s30 + $0xc8] sm:$0xff]  ;;  %v405_v41 = vadd.f32 %v360_v37, %v359_v36  ;;  %v363_v43 = vld [vmem:[%s5518_s30 + $0xf0] sm:$0xff] }
  0x4f   : > { %v402_v42 = vadd.f32 %v358_v39, %v357_v38  ;;  %v364_v44 = vld [vmem:[%s5518_s30 + $0xf8] sm:$0xff]  ;;  %v361_v45 = vld [vmem:[%s5518_s30 + $0xe0] sm:$0xff]  ;;  %v362_v46 = vld [vmem:[%s5518_s30 + $0xe8] sm:$0xff] }
  0x50   : > { %382 = vadd.xlane.f32.xlu1 %v381_v16  ;;  %v411_v47 = vadd.f32 %v364_v44, %v363_v43  ;;  %v408_v48 = vadd.f32 %v362_v46, %v361_v45  ;;  %v1902_v49 = vld [vmem:[%s5527_s20] sm:$0xff]  ;;  %v1903_v50 = vld [vmem:[%s5527_s20 + $0x8] sm:$0xff]  ;;  %v1904_v51 = vld [vmem:[%s5527_s20 + $0x10] sm:$0xff] }
  0x51   : > { %379 = vadd.xlane.f32.xlu0 %v378_v17  ;;  %v1905_v52 = vld [vmem:[%s5527_s20 + $0x18] sm:$0xff]  ;;  %v1935_v53 = vadd.f32 %v1903_v50, %v1902_v49  ;;  %v1908_v55 = vld [vmem:[%s5527_s20 + $0x30] sm:$0xff]  ;;  %v1906_v57 = vld [vmem:[%s5527_s20 + $0x20] sm:$0xff] }
  0x52   : > { %v1938_v54 = vadd.f32 %v1905_v52, %v1904_v51  ;;  %v1909_v56 = vld [vmem:[%s5527_s20 + $0x38] sm:$0xff]  ;;  %v1907_v58 = vld [vmem:[%s5527_s20 + $0x28] sm:$0xff]  ;;  %v1912_v61 = vld [vmem:[%s5527_s20 + $0x50] sm:$0xff] }
  0x53   : > { %v1944_v59 = vadd.f32 %v1909_v56, %v1908_v55  ;;  %v1941_v60 = vadd.f32 %v1907_v58, %v1906_v57  ;;  %v1913_v62 = vld [vmem:[%s5527_s20 + $0x58] sm:$0xff]  ;;  %v1910_v63 = vld [vmem:[%s5527_s20 + $0x40] sm:$0xff]  ;;  %v1911_v0 = vld [vmem:[%s5527_s20 + $0x48] sm:$0xff] }
  0x54   : > { %388 = vadd.xlane.f32.xlu1 %v387_v22  ;;  %v1950_v1 = vadd.f32 %v1913_v62, %v1912_v61  ;;  %v1947_v2 = vadd.f32 %v1911_v0, %v1910_v63  ;;  %v1916_v3 = vld [vmem:[%s5527_s20 + $0x70] sm:$0xff]  ;;  %v1917_v4 = vld [vmem:[%s5527_s20 + $0x78] sm:$0xff]  ;;  %v1914_v5 = vld [vmem:[%s5527_s20 + $0x60] sm:$0xff] }
  0x55   : > { %385 = vadd.xlane.f32.xlu0 %v384_v23  ;;  %v1915_v6 = vld [vmem:[%s5527_s20 + $0x68] sm:$0xff]  ;;  %v1956_v7 = vadd.f32 %v1917_v4, %v1916_v3  ;;  %v1920_v9 = vld [vmem:[%s5527_s20 + $0x90] sm:$0xff]  ;;  %v1921_v10 = vld [vmem:[%s5527_s20 + $0x98] sm:$0xff] }
  0x56   : > { %v1953_v8 = vadd.f32 %v1915_v6, %v1914_v5  ;;  %v1918_v11 = vld [vmem:[%s5527_s20 + $0x80] sm:$0xff]  ;;  %v1919_v12 = vld [vmem:[%s5527_s20 + $0x88] sm:$0xff]  ;;  %v1962_v13 = vadd.f32 %v1921_v10, %v1920_v9  ;;  %v1924_v15 = vld [vmem:[%s5527_s20 + $0xb0] sm:$0xff] }
  0x57   : > { %v1959_v14 = vadd.f32 %v1919_v12, %v1918_v11  ;;  %v1925_v16 = vld [vmem:[%s5527_s20 + $0xb8] sm:$0xff]  ;;  %v1922_v17 = vld [vmem:[%s5527_s20 + $0xa0] sm:$0xff]  ;;  %v1923_v18 = vld [vmem:[%s5527_s20 + $0xa8] sm:$0xff] }
  0x58   : > { %394 = vadd.xlane.f32.xlu1 %v393_v28  ;;  %v1968_v19 = vadd.f32 %v1925_v16, %v1924_v15  ;;  %v1965_v20 = vadd.f32 %v1923_v18, %v1922_v17  ;;  %v1928_v21 = vld [vmem:[%s5527_s20 + $0xd0] sm:$0xff]  ;;  %v1929_v22 = vld [vmem:[%s5527_s20 + $0xd8] sm:$0xff]  ;;  %v1926_v23 = vld [vmem:[%s5527_s20 + $0xc0] sm:$0xff]  ;;  %v430_v17 = vlaneseq  ;;  %v5373_v18 = vmov 1966171168  }
  0x59   : > { %391 = vadd.xlane.f32.xlu0 %v390_v29  ;;  %v1927_v24 = vld [vmem:[%s5527_s20 + $0xc8] sm:$0xff]  ;;  %v1974_v25 = vadd.f32 %v1929_v22, %v1928_v21  ;;  %v1932_v27 = vld [vmem:[%s5527_s20 + $0xf0] sm:$0xff]  ;;  %v1933_v28 = vld [vmem:[%s5527_s20 + $0xf8] sm:$0xff] }
  0x5a   : > { %v1971_v26 = vadd.f32 %v1927_v24, %v1926_v23  ;;  %v1930_v29 = vld [vmem:[%s5527_s20 + $0xe0] sm:$0xff]  ;;  %v1931_v30 = vld [vmem:[%s5527_s20 + $0xe8] sm:$0xff]  ;;  %v1980_v31 = vadd.f32 %v1933_v28, %v1932_v27  ;;  %v3442_v36 = vld [vmem:[%s5598_s22 + $0x18] sm:$0xff] }
  0x5b   : > { %v1977_v32 = vadd.f32 %v1931_v30, %v1930_v29  ;;  %v3439_v33 = vld [vmem:[%s5598_s22] sm:$0xff]  ;;  %v3445_v39 = vld [vmem:[%s5598_s22 + $0x30] sm:$0xff]  ;;  %v3446_v40 = vld [vmem:[%s5598_s22 + $0x38] sm:$0xff] }
  0x5c   : > { %400 = vadd.xlane.f32.xlu1 %v399_v34  ;;  %v3440_v34 = vld [vmem:[%s5598_s22 + $0x8] sm:$0xff]  ;;  %v3481_v43 = vadd.f32 %v3446_v40, %v3445_v39  ;;  %v3449_v45 = vld [vmem:[%s5598_s22 + $0x50] sm:$0xff]  ;;  %v3450_v46 = vld [vmem:[%s5598_s22 + $0x58] sm:$0xff] }
  0x5d   : > { %397 = vadd.xlane.f32.xlu0 %v396_v35  ;;  %v3441_v35 = vld [vmem:[%s5598_s22 + $0x10] sm:$0xff]  ;;  %v3472_v37 = vadd.f32 %v3440_v34, %v3439_v33  ;;  %v3487_v49 = vadd.f32 %v3450_v46, %v3449_v45  ;;  %v3454_v52 = vld [vmem:[%s5598_s22 + $0x78] sm:$0xff] }
  0x5e   : > { %v3475_v38 = vadd.f32 %v3442_v36, %v3441_v35  ;;  %v3453_v51 = vld [vmem:[%s5598_s22 + $0x70] sm:$0xff]  ;;  %v3458_v58 = vld [vmem:[%s5598_s22 + $0x98] sm:$0xff] }
  0x5f   : > { %v3493_v55 = vadd.f32 %v3454_v52, %v3453_v51  ;;  %v3457_v57 = vld [vmem:[%s5598_s22 + $0x90] sm:$0xff]  ;;  %v3462_v0 = vld [vmem:[%s5598_s22 + $0xb8] sm:$0xff] }
  0x60   : > { %406 = vadd.xlane.f32.xlu1 %v405_v41  ;;  %v3443_v41 = vld [vmem:[%s5598_s22 + $0x20] sm:$0xff]  ;;  %v3499_v61 = vadd.f32 %v3458_v58, %v3457_v57  ;;  %v3461_v63 = vld [vmem:[%s5598_s22 + $0xb0] sm:$0xff]  ;;  %v3466_v6 = vld [vmem:[%s5598_s22 + $0xd8] sm:$0xff] }
  0x61   : > { %403 = vadd.xlane.f32.xlu0 %v402_v42  ;;  %v3444_v42 = vld [vmem:[%s5598_s22 + $0x28] sm:$0xff]  ;;  %v3505_v3 = vadd.f32 %v3462_v0, %v3461_v63  ;;  %v3465_v5 = vld [vmem:[%s5598_s22 + $0xd0] sm:$0xff]  ;;  %v3470_v12 = vld [vmem:[%s5598_s22 + $0xf8] sm:$0xff] }
  0x62   : > { %v3478_v44 = vadd.f32 %v3444_v42, %v3443_v41  ;;  %v3511_v9 = vadd.f32 %v3466_v6, %v3465_v5  ;;  %v3469_v11 = vld [vmem:[%s5598_s22 + $0xf0] sm:$0xff] }
  0x63   : > { %v3517_v15 = vadd.f32 %v3470_v12, %v3469_v11 }
  0x64   : > { %412 = vadd.xlane.f32.xlu1 %v411_v47  ;;  %v3447_v47 = vld [vmem:[%s5598_s22 + $0x40] sm:$0xff] }
  0x65   : > { %409 = vadd.xlane.f32.xlu0 %v408_v48  ;;  %v3448_v48 = vld [vmem:[%s5598_s22 + $0x48] sm:$0xff] }
  0x66   : > { %v3484_v50 = vadd.f32 %v3448_v48, %v3447_v47 }
  0x68   : > { %1936 = vadd.xlane.f32.xlu1 %v1935_v53  ;;  %v3451_v53 = vld [vmem:[%s5598_s22 + $0x60] sm:$0xff] }
  0x69   : > { %1939 = vadd.xlane.f32.xlu0 %v1938_v54  ;;  %v3452_v54 = vld [vmem:[%s5598_s22 + $0x68] sm:$0xff] }
  0x6a   : > { %v3490_v56 = vadd.f32 %v3452_v54, %v3451_v53 }
  0x6c   : > { %1945 = vadd.xlane.f32.xlu1 %v1944_v59  ;;  %v3455_v59 = vld [vmem:[%s5598_s22 + $0x80] sm:$0xff] }
  0x6d   : > { %1942 = vadd.xlane.f32.xlu0 %v1941_v60  ;;  %v3456_v60 = vld [vmem:[%s5598_s22 + $0x88] sm:$0xff] }
  0x6e   : > { %v3496_v62 = vadd.f32 %v3456_v60, %v3455_v59 }
  0x70   : > { %1951 = vadd.xlane.f32.xlu1 %v1950_v1  ;;  %v3459_v1 = vld [vmem:[%s5598_s22 + $0xa0] sm:$0xff] }
  0x71   : > { %1948 = vadd.xlane.f32.xlu0 %v1947_v2  ;;  %v3460_v2 = vld [vmem:[%s5598_s22 + $0xa8] sm:$0xff] }
  0x72   : > { %v3502_v4 = vadd.f32 %v3460_v2, %v3459_v1 }
  0x74   : > { %1957 = vadd.xlane.f32.xlu1 %v1956_v7  ;;  %v3463_v7 = vld [vmem:[%s5598_s22 + $0xc0] sm:$0xff] }
  0x75   : > { %1954 = vadd.xlane.f32.xlu0 %v1953_v8  ;;  %v3464_v8 = vld [vmem:[%s5598_s22 + $0xc8] sm:$0xff] }
  0x76   : > { %v3508_v10 = vadd.f32 %v3464_v8, %v3463_v7 }
  0x78   : > { %1963 = vadd.xlane.f32.xlu1 %v1962_v13  ;;  %v3467_v13 = vld [vmem:[%s5598_s22 + $0xe0] sm:$0xff] }
  0x79   : > { %1960 = vadd.xlane.f32.xlu0 %v1959_v14  ;;  %v3468_v14 = vld [vmem:[%s5598_s22 + $0xe8] sm:$0xff] }
  0x7a   : > { %v3514_v16 = vadd.f32 %v3468_v14, %v3467_v13 }
  0x7c   : > { %1969 = vadd.xlane.f32.xlu1 %v1968_v19  ;;  %v947_v19 = vunpack.c.l.s4 %v5373_v18 }
  0x7d   : > { %1966 = vadd.xlane.f32.xlu0 %v1965_v20  ;;  %v5633_v20 = vshrl.u32 %v430_v17, 7 }
  0x7e   : > { %v948_v21 = vunpack.c.0.s8 %v947_v19 }
  0x7f   : > { %v5636_v22 = vsub.s32 0, %v5633_v20  ;;  %v5639_v23 = vsub.s32 1, %v5633_v20  ;;  %v5642_v24 = vsub.s32 2, %v5633_v20  ;;  %v5651_v27 = vsub.s32 5, %v5633_v20 }
  0x80   : > { %1975 = vadd.xlane.f32.xlu1 %v1974_v25  ;;  %v5645_v25 = vsub.s32 3, %v5633_v20  ;;  %v5654_v28 = vsub.s32 6, %v5633_v20  ;;  %v5657_v29 = vsub.s32 7, %v5633_v20 }
  0x81   : > { %1972 = vadd.xlane.f32.xlu0 %v1971_v26  ;;  %v5648_v26 = vsub.s32 4, %v5633_v20 }
  0x84   : > { %1981 = vadd.xlane.f32.xlu1 %v1980_v31  ;;  %v5660_v31 = vsub.s32 %v948_v21, %v5633_v20 }
  0x85   : > { %1978 = vadd.xlane.f32.xlu0 %v1977_v32 }
  0x88   : > { %3473 = vadd.xlane.f32.xlu1 %v3472_v37 }
  0x89   : > { %3476 = vadd.xlane.f32.xlu0 %v3475_v38 }
  0x8c   : > { %3482 = vadd.xlane.f32.xlu1 %v3481_v43 }
  0x8d   : > { %3479 = vadd.xlane.f32.xlu0 %v3478_v44 }
  0x90   : > { %3488 = vadd.xlane.f32.xlu1 %v3487_v49 }
  0x91   : > { %3485 = vadd.xlane.f32.xlu0 %v3484_v50 }
  0x94   : > { %3494 = vadd.xlane.f32.xlu1 %v3493_v55 }
  0x95   : > { %3491 = vadd.xlane.f32.xlu0 %v3490_v56 }
  0x98   : > { %3500 = vadd.xlane.f32.xlu1 %v3499_v61 }
  0x99   : > { %3497 = vadd.xlane.f32.xlu0 %v3496_v62 }
  0x9c   : > { %3506 = vadd.xlane.f32.xlu1 %v3505_v3 }
  0x9d   : > { %3503 = vadd.xlane.f32.xlu0 %v3502_v4 }
  0xa0   : > { %3512 = vadd.xlane.f32.xlu1 %v3511_v9 }
  0xa1   : > { %3509 = vadd.xlane.f32.xlu0 %v3508_v10 }
  0xa4   : > { %3518 = vadd.xlane.f32.xlu1 %v3517_v15 }
  0xa5   : > { %3515 = vadd.xlane.f32.xlu0 %v3514_v16 }
  0xd1   : > { %v374_v30 = vpop.xlane.xlu1 %373 }
  0xd2   : > { %v368_v32 = vpop.xlane.xlu0 %367  ;;  %v497_v33 = vrot.slane %v374_v30, %v5636_v22  ;;  %v501_v34 = vrot.slane %v374_v30, %v5639_v23  ;;  %v505_v35 = vrot.slane %v374_v30, %v5642_v24  ;;  %v509_v36 = vrot.slane %v374_v30, %v5645_v25 }
  0xd3   : > { %v433_v37 = vrot.slane %v368_v32, %v5636_v22  ;;  %v437_v38 = vrot.slane %v368_v32, %v5639_v23  ;;  %v441_v39 = vrot.slane %v368_v32, %v5642_v24  ;;  %v445_v40 = vrot.slane %v368_v32, %v5645_v25 }
  0xd4   : > { %v449_v41 = vrot.slane %v368_v32, %v5648_v26  ;;  %v453_v42 = vrot.slane %v368_v32, %v5651_v27  ;;  %v457_v43 = vrot.slane %v368_v32, %v5654_v28  ;;  %v461_v44 = vrot.slane %v368_v32, %v5657_v29 }
  0xd5   : > { %v5674_v45 = vpop.xlane.xlu1 %376  ;;  %v942_v46 = vcombine.low %v433_v37, %v437_v38  ;;  %v943_v47 = vcombine.low %v441_v39, %v445_v40  ;;  %v513_v48 = vrot.slane %v374_v30, %v5648_v26  ;;  %v517_v49 = vrot.slane %v374_v30, %v5651_v27 }
  0xd6   : > { %v371_v50 = vpop.xlane.xlu0 %370  ;;  %v944_v51 = vcombine.low %v449_v41, %v453_v42  ;;  %v945_v52 = vcombine.low %v457_v43, %v461_v44  ;;  %v521_v53 = vrot.slane %v374_v30, %v5654_v28  ;;  %v525_v54 = vrot.slane %v374_v30, %v5657_v29 }
  0xd7   : > { %v952_v55 = vrot.slane %v942_v46, %v5660_v31  ;;  %v959_v56 = vrot.slane %v943_v47, %v5660_v31  ;;  %v465_v57 = vrot.slane %v371_v50, %v5636_v22  ;;  %v469_v58 = vrot.slane %v371_v50, %v5639_v23 }
  0xd8   : > { %v966_v59 = vrot.slane %v944_v51, %v5660_v31  ;;  %v973_v60 = vrot.slane %v945_v52, %v5660_v31  ;;  %v473_v61 = vrot.slane %v371_v50, %v5642_v24  ;;  %v477_v62 = vrot.slane %v371_v50, %v5645_v25 }
  0xd9   : > { %v5688_v63 = vpop.xlane.xlu1 %382  ;;  %v974_v0 = vcombine.low %v952_v55, %v959_v56  ;;  %v481_v1 = vrot.slane %v371_v50, %v5648_v26  ;;  %v485_v2 = vrot.slane %v371_v50, %v5651_v27  ;;  %v489_v3 = vrot.slane %v371_v50, %v5654_v28 }
  0xda   : > { %v975_v4 = vcombine.low %v966_v59, %v973_v60  ;;  %v493_v5 = vrot.slane %v371_v50, %v5657_v29  ;;  %v991_v6 = vcombine.low %v465_v57, %v469_v58  ;;  %v992_v7 = vcombine.low %v473_v61, %v477_v62  ;;  %v380_v62 = vpop.xlane.xlu0 %379 }
  0xdb   : > { %v982_v8 = vrot.slane %v974_v0, %v5660_v31  ;;  %v993_v9 = vcombine.low %v481_v1, %v485_v2  ;;  %v1040_v10 = vcombine.low %v497_v33, %v501_v34  ;;  %v1041_v11 = vcombine.low %v505_v35, %v509_v36 }
  0xdc   : > { %v989_v12 = vrot.slane %v975_v4, %v5660_v31  ;;  %v994_v13 = vcombine.low %v489_v3, %v493_v5  ;;  %v1001_v14 = vrot.slane %v991_v6, %v5660_v31  ;;  %v1008_v15 = vrot.slane %v992_v7, %v5660_v31 }
  0xdd   : > { %v5698_v16 = vpop.xlane.xlu1 %388  ;;  %v1015_v18 = vrot.slane %v993_v9, %v5660_v31  ;;  %v1042_v19 = vcombine.low %v513_v48, %v517_v49  ;;  %v1043_v21 = vcombine.low %v521_v53, %v525_v54  ;;  %v1050_v30 = vrot.slane %v1040_v10, %v5660_v31 }
  0xde   : > { %v990_v32 = vcombine.low %v982_v8, %v989_v12  ;;  %v1022_v37 = vrot.slane %v994_v13, %v5660_v31  ;;  %v1023_v33 = vcombine.low %v1001_v14, %v1008_v15  ;;  %v1057_v34 = vrot.slane %v1041_v11, %v5660_v31 }
  0xdf   : > { %v1064_v35 = vrot.slane %v1042_v19, %v5660_v31  ;;  %v1071_v36 = vrot.slane %v1043_v21, %v5660_v31  ;;  %v529_v38 = vrot.slane %v5674_v45, %v5636_v22  ;;  %v533_v39 = vrot.slane %v5674_v45, %v5639_v23 }
  0xe0   : > { %1727 = vperm.xlu0 %5225, %v990_v32   ;;  %v1024_v40 = vcombine.low %v1015_v18, %v1022_v37  ;;  %v1031_v41 = vrot.slane %v1023_v33, %v5660_v31  ;;  %v1072_v42 = vcombine.low %v1050_v30, %v1057_v34  ;;  %v537_v43 = vrot.slane %v5674_v45, %v5642_v24 }
  0xe1   : > { %v395_v44 = vpop.xlane.xlu1 %394  ;;  %v1073_v46 = vcombine.low %v1064_v35, %v1071_v36  ;;  %v541_v47 = vrot.slane %v5674_v45, %v5645_v25  ;;  %v545_v48 = vrot.slane %v5674_v45, %v5648_v26  ;;  %v549_v49 = vrot.slane %v5674_v45, %v5651_v27 }
  0xe2   : > { %v1038_v50 = vrot.slane %v1024_v40, %v5660_v31  ;;  %v1080_v51 = vrot.slane %v1072_v42, %v5660_v31  ;;  %v553_v52 = vrot.slane %v5674_v45, %v5654_v28  ;;  %v557_v53 = vrot.slane %v5674_v45, %v5657_v29 }
  0xe3   : > { %v1087_v54 = vrot.slane %v1073_v46, %v5660_v31  ;;  %v1089_v55 = vcombine.low %v529_v38, %v533_v39  ;;  %v1090_v56 = vcombine.low %v537_v43, %v541_v47  ;;  %v1091_v57 = vcombine.low %v545_v48, %v549_v49 }
  0xe4   : > { %v1039_v58 = vcombine.low %v1031_v41, %v1038_v50  ;;  %v1092_v59 = vcombine.low %v553_v52, %v557_v53  ;;  %v721_v60 = vrot.slane %v395_v44, %v5636_v22  ;;  %v725_v61 = vrot.slane %v395_v44, %v5639_v23 }
  0xe5   : > { %v1088_v0 = vcombine.low %v1080_v51, %v1087_v54  ;;  %v1099_v1 = vrot.slane %v1089_v55, %v5660_v31  ;;  %v1106_v2 = vrot.slane %v1090_v56, %v5660_v31  ;;  %v1113_v3 = vrot.slane %v1091_v57, %v5660_v31  ;;  %v401_v34 = vpop.xlane.xlu1 %400 }
  0xe6   : > { %1730 = vperm.xlu1 %5226, %v1039_v58   ;;  %v1120_v45 = vrot.slane %v1092_v59, %v5660_v31  ;;  %v729_v4 = vrot.slane %v395_v44, %v5642_v24  ;;  %v733_v5 = vrot.slane %v395_v44, %v5645_v25  ;;  %v737_v6 = vrot.slane %v395_v44, %v5648_v26 }
  0xe7   : > { %v1121_v7 = vcombine.low %v1099_v1, %v1106_v2  ;;  %v741_v8 = vrot.slane %v395_v44, %v5651_v27  ;;  %v745_v9 = vrot.slane %v395_v44, %v5654_v28  ;;  %v749_v10 = vrot.slane %v395_v44, %v5657_v29 }
  0xe8   : > { %v1122_v11 = vcombine.low %v1113_v3, %v1120_v45  ;;  %v1383_v12 = vcombine.low %v721_v60, %v725_v61  ;;  %v1384_v13 = vcombine.low %v729_v4, %v733_v5  ;;  %v561_v14 = vrot.slane %v380_v62, %v5636_v22 }
  0xe9   : > { %v1129_v15 = vrot.slane %v1121_v7, %v5660_v31  ;;  %v1385_v18 = vcombine.low %v737_v6, %v741_v8  ;;  %v1386_v19 = vcombine.low %v745_v9, %v749_v10  ;;  %v565_v21 = vrot.slane %v380_v62, %v5639_v23 }
  0xea   : > { %1733 = vperm.xlu1 %5226, %v1088_v0   ;;  %v1136_v30 = vrot.slane %v1122_v11, %v5660_v31  ;;  %v1393_v32 = vrot.slane %v1383_v12, %v5660_v31  ;;  %v1400_v37 = vrot.slane %v1384_v13, %v5660_v31  ;;  %v569_v33 = vrot.slane %v380_v62, %v5642_v24 }
  0xeb   : > { %v1407_v35 = vrot.slane %v1385_v18, %v5660_v31  ;;  %v1414_v36 = vrot.slane %v1386_v19, %v5660_v31  ;;  %v573_v38 = vrot.slane %v380_v62, %v5645_v25  ;;  %v577_v39 = vrot.slane %v380_v62, %v5648_v26  ;;  %v407_v19 = vpop.xlane.xlu1 %406 }
  0xec   : > { %v1137_v40 = vcombine.low %v1129_v15, %v1136_v30  ;;  %v1415_v41 = vcombine.low %v1393_v32, %v1400_v37  ;;  %v581_v42 = vrot.slane %v380_v62, %v5651_v27  ;;  %v585_v43 = vrot.slane %v380_v62, %v5654_v28 }
  0xed   : > { %v1416_v44 = vcombine.low %v1407_v35, %v1414_v36  ;;  %v589_v46 = vrot.slane %v380_v62, %v5657_v29  ;;  %v1138_v47 = vcombine.low %v561_v14, %v565_v21  ;;  %v1139_v48 = vcombine.low %v569_v33, %v573_v38 }
  0xee   : > { %1736 = vperm.xlu1 %5226, %v1137_v40   ;;  %v1423_v49 = vrot.slane %v1415_v41, %v5660_v31  ;;  %v1140_v50 = vcombine.low %v577_v39, %v581_v42  ;;  %v785_v51 = vrot.slane %v401_v34, %v5636_v22  ;;  %v789_v52 = vrot.slane %v401_v34, %v5639_v23 }
  0xef   : > { %v1430_v53 = vrot.slane %v1416_v44, %v5660_v31  ;;  %v1141_v54 = vcombine.low %v585_v43, %v589_v46  ;;  %v1148_v55 = vrot.slane %v1138_v47, %v5660_v31  ;;  %v1155_v56 = vrot.slane %v1139_v48, %v5660_v31 }
  0xf0   : > { %v1162_v57 = vrot.slane %v1140_v50, %v5660_v31  ;;  %v793_v58 = vrot.slane %v401_v34, %v5642_v24  ;;  %v797_v59 = vrot.slane %v401_v34, %v5645_v25  ;;  %v801_v60 = vrot.slane %v401_v34, %v5648_v26  ;;  %v386_v50 = vpop.xlane.xlu0 %385 }
  0xf1   : > { %v1431_v61 = vcombine.low %v1423_v49, %v1430_v53  ;;  %v1169_v62 = vrot.slane %v1141_v54, %v5660_v31  ;;  %v1170_v0 = vcombine.low %v1148_v55, %v1155_v56  ;;  %v805_v1 = vrot.slane %v401_v34, %v5651_v27 }
  0xf2   : > { %v809_v2 = vrot.slane %v401_v34, %v5654_v28  ;;  %v813_v3 = vrot.slane %v401_v34, %v5657_v29  ;;  %v1481_v45 = vcombine.low %v785_v51, %v789_v52  ;;  %v1482_v4 = vcombine.low %v793_v58, %v797_v59 }
  0xf3   : > { %1754 = vperm.xlu0 %5225, %v1431_v61   ;;  %v1171_v5 = vcombine.low %v1162_v57, %v1169_v62  ;;  %v1178_v6 = vrot.slane %v1170_v0, %v5660_v31  ;;  %v1483_v7 = vcombine.low %v801_v60, %v805_v1  ;;  %v593_v8 = vrot.slane %v5688_v63, %v5636_v22 }
  0xf4   : > { %v1484_v9 = vcombine.low %v809_v2, %v813_v3  ;;  %v1491_v10 = vrot.slane %v1481_v45, %v5660_v31  ;;  %v1498_v11 = vrot.slane %v1482_v4, %v5660_v31  ;;  %v597_v12 = vrot.slane %v5688_v63, %v5639_v23 }
  0xf5   : > { %v1185_v13 = vrot.slane %v1171_v5, %v5660_v31  ;;  %v1505_v14 = vrot.slane %v1483_v7, %v5660_v31  ;;  %v601_v15 = vrot.slane %v5688_v63, %v5642_v24  ;;  %v605_v18 = vrot.slane %v5688_v63, %v5645_v25  ;;  %v413_v7 = vpop.xlane.xlu1 %412 }
  0xf6   : > { %v1512_v21 = vrot.slane %v1484_v9, %v5660_v31  ;;  %v1513_v30 = vcombine.low %v1491_v10, %v1498_v11  ;;  %v609_v32 = vrot.slane %v5688_v63, %v5648_v26  ;;  %v613_v37 = vrot.slane %v5688_v63, %v5651_v27 }
  0xf7   : > { %v1186_v33 = vcombine.low %v1178_v6, %v1185_v13  ;;  %v617_v34 = vrot.slane %v5688_v63, %v5654_v28  ;;  %v621_v35 = vrot.slane %v5688_v63, %v5657_v29  ;;  %v1187_v36 = vcombine.low %v593_v8, %v597_v12  ;;  %v5813_v12 = vpop.xlane.xlu0 %391 }
  0xf8   : > { %v1514_v38 = vcombine.low %v1505_v14, %v1512_v21  ;;  %v1521_v39 = vrot.slane %v1513_v30, %v5660_v31  ;;  %v1188_v40 = vcombine.low %v601_v15, %v605_v18  ;;  %v1189_v41 = vcombine.low %v609_v32, %v613_v37 }
  0xf9   : > { %1739 = vperm.xlu1 %5226, %v1186_v33   ;;  %v1190_v42 = vcombine.low %v617_v34, %v621_v35  ;;  %v1197_v43 = vrot.slane %v1187_v36, %v5660_v31  ;;  %v849_v44 = vrot.slane %v407_v19, %v5636_v22  ;;  %v853_v46 = vrot.slane %v407_v19, %v5639_v23 }
  0xfa   : > { %v1528_v47 = vrot.slane %v1514_v38, %v5660_v31  ;;  %v1204_v48 = vrot.slane %v1188_v40, %v5660_v31  ;;  %v1211_v63 = vrot.slane %v1189_v41, %v5660_v31  ;;  %v857_v49 = vrot.slane %v407_v19, %v5642_v24 }
  0xfb   : > { %v1218_v51 = vrot.slane %v1190_v42, %v5660_v31  ;;  %v861_v52 = vrot.slane %v407_v19, %v5645_v25  ;;  %v865_v53 = vrot.slane %v407_v19, %v5648_v26  ;;  %v869_v54 = vrot.slane %v407_v19, %v5651_v27 }
  0xfc   : > { %v1529_v55 = vcombine.low %v1521_v39, %v1528_v47  ;;  %v1219_v56 = vcombine.low %v1197_v43, %v1204_v48  ;;  %v873_v57 = vrot.slane %v407_v19, %v5654_v28  ;;  %v877_v58 = vrot.slane %v407_v19, %v5657_v29 }
  0xfd   : > { %v1220_v59 = vcombine.low %v1211_v63, %v1218_v51  ;;  %v1579_v60 = vcombine.low %v849_v44, %v853_v46  ;;  %v1580_v61 = vcombine.low %v857_v49, %v861_v52  ;;  %v1581_v62 = vcombine.low %v865_v53, %v869_v54  ;;  %v5830_v49 = vpop.xlane.xlu0 %397 }
  0xfe   : > { %1760 = vperm.xlu0 %5225, %v1529_v55   ;;  %v1227_v0 = vrot.slane %v1219_v56, %v5660_v31  ;;  %v1582_v1 = vcombine.low %v873_v57, %v877_v58  ;;  %v625_v2 = vrot.slane %v386_v50, %v5636_v22  ;;  %v629_v3 = vrot.slane %v386_v50, %v5639_v23 }
  0xff   : > { %v1234_v45 = vrot.slane %v1220_v59, %v5660_v31  ;;  %v1589_v4 = vrot.slane %v1579_v60, %v5660_v31  ;;  %v1596_v5 = vrot.slane %v1580_v61, %v5660_v31  ;;  %v1603_v6 = vrot.slane %v1581_v62, %v5660_v31 }
 0x100   : > { %v1610_v8 = vrot.slane %v1582_v1, %v5660_v31  ;;  %v633_v9 = vrot.slane %v386_v50, %v5642_v24  ;;  %v637_v10 = vrot.slane %v386_v50, %v5645_v25  ;;  %v641_v11 = vrot.slane %v386_v50, %v5648_v26 }
 0x101   : > { %v1235_v13 = vcombine.low %v1227_v0, %v1234_v45  ;;  %v1611_v14 = vcombine.low %v1589_v4, %v1596_v5  ;;  %v645_v15 = vrot.slane %v386_v50, %v5651_v27  ;;  %v649_v18 = vrot.slane %v386_v50, %v5654_v28 }
 0x102   : > { %v1612_v19 = vcombine.low %v1603_v6, %v1610_v8  ;;  %v653_v21 = vrot.slane %v386_v50, %v5657_v29  ;;  %v1236_v30 = vcombine.low %v625_v2, %v629_v3  ;;  %v1237_v32 = vcombine.low %v633_v9, %v637_v10  ;;  %v1937_v3 = vpop.xlane.xlu1 %1936 }
 0x103   : > { %1742 = vperm.xlu1 %5226, %v1235_v13   ;;  %v1619_v37 = vrot.slane %v1611_v14, %v5660_v31  ;;  %v1238_v33 = vcombine.low %v641_v11, %v645_v15  ;;  %v913_v34 = vrot.slane %v413_v7, %v5636_v22  ;;  %v917_v35 = vrot.slane %v413_v7, %v5639_v23  ;;  %v5856_v11 = vpop.xlane.xlu0 %403 }
 0x104   : > { %v1626_v36 = vrot.slane %v1612_v19, %v5660_v31  ;;  %v1239_v38 = vcombine.low %v649_v18, %v653_v21  ;;  %v1246_v39 = vrot.slane %v1236_v30, %v5660_v31  ;;  %v1253_v40 = vrot.slane %v1237_v32, %v5660_v31 }
 0x105   : > { %v1260_v41 = vrot.slane %v1238_v33, %v5660_v31  ;;  %v921_v42 = vrot.slane %v413_v7, %v5642_v24  ;;  %v925_v43 = vrot.slane %v413_v7, %v5645_v25  ;;  %v929_v44 = vrot.slane %v413_v7, %v5648_v26 }
 0x106   : > { %v1627_v46 = vcombine.low %v1619_v37, %v1626_v36  ;;  %v1267_v47 = vrot.slane %v1239_v38, %v5660_v31  ;;  %v1268_v48 = vcombine.low %v1246_v39, %v1253_v40  ;;  %v933_v63 = vrot.slane %v413_v7, %v5651_v27 }
 0x107   : > { %v937_v50 = vrot.slane %v413_v7, %v5654_v28  ;;  %v941_v51 = vrot.slane %v413_v7, %v5657_v29  ;;  %v1677_v52 = vcombine.low %v913_v34, %v917_v35  ;;  %v1678_v53 = vcombine.low %v921_v42, %v925_v43 }
 0x108   : > { %1766 = vperm.xlu0 %5225, %v1627_v46   ;;  %v1269_v54 = vcombine.low %v1260_v41, %v1267_v47  ;;  %v1276_v55 = vrot.slane %v1268_v48, %v5660_v31  ;;  %v1679_v56 = vcombine.low %v929_v44, %v933_v63  ;;  %v657_v57 = vrot.slane %v5698_v16, %v5636_v22  ;;  %v5872_v63 = vpop.xlane.xlu0 %409 }
 0x109   : > { %v1680_v58 = vcombine.low %v937_v50, %v941_v51  ;;  %v1687_v59 = vrot.slane %v1677_v52, %v5660_v31  ;;  %v1694_v60 = vrot.slane %v1678_v53, %v5660_v31  ;;  %v661_v61 = vrot.slane %v5698_v16, %v5639_v23 }
 0x10a   : > { %v1283_v62 = vrot.slane %v1269_v54, %v5660_v31  ;;  %v1701_v0 = vrot.slane %v1679_v56, %v5660_v31  ;;  %v665_v1 = vrot.slane %v5698_v16, %v5642_v24  ;;  %v669_v2 = vrot.slane %v5698_v16, %v5645_v25 }
 0x10b   : > { %v1708_v45 = vrot.slane %v1680_v58, %v5660_v31  ;;  %v1709_v4 = vcombine.low %v1687_v59, %v1694_v60  ;;  %v673_v5 = vrot.slane %v5698_v16, %v5648_v26  ;;  %v677_v6 = vrot.slane %v5698_v16, %v5651_v27  ;;  %v1946_v58 = vpop.xlane.xlu1 %1945 }
 0x10c   : > { %v1284_v7 = vcombine.low %v1276_v55, %v1283_v62  ;;  %v681_v8 = vrot.slane %v5698_v16, %v5654_v28  ;;  %v685_v9 = vrot.slane %v5698_v16, %v5657_v29  ;;  %v1285_v10 = vcombine.low %v657_v57, %v661_v61 }
 0x10d   : > { %v1710_v13 = vcombine.low %v1701_v0, %v1708_v45  ;;  %v1717_v14 = vrot.slane %v1709_v4, %v5660_v31  ;;  %v1286_v15 = vcombine.low %v665_v1, %v669_v2  ;;  %v1287_v18 = vcombine.low %v673_v5, %v677_v6 }
 0x10e   : > { %1745 = vperm.xlu1 %5226, %v1284_v7   ;;  %v1288_v19 = vcombine.low %v681_v8, %v685_v9  ;;  %v1295_v21 = vrot.slane %v1285_v10, %v5660_v31  ;;  %v2002_v30 = vrot.slane %v1937_v3, %v5636_v22  ;;  %v2006_v32 = vrot.slane %v1937_v3, %v5639_v23 }
 0x10f   : > { %v1724_v37 = vrot.slane %v1710_v13, %v5660_v31  ;;  %v1302_v16 = vrot.slane %v1286_v15, %v5660_v31  ;;  %v1309_v33 = vrot.slane %v1287_v18, %v5660_v31  ;;  %v2010_v34 = vrot.slane %v1937_v3, %v5642_v24  ;;  %v5899_v13 = vpop.xlane.xlu0 %1939 }
 0x110   : > { %v1316_v35 = vrot.slane %v1288_v19, %v5660_v31  ;;  %v2014_v36 = vrot.slane %v1937_v3, %v5645_v25  ;;  %v2018_v38 = vrot.slane %v1937_v3, %v5648_v26  ;;  %v2022_v39 = vrot.slane %v1937_v3, %v5651_v27 }
 0x111   : > { %v1725_v40 = vcombine.low %v1717_v14, %v1724_v37  ;;  %v1317_v41 = vcombine.low %v1295_v21, %v1302_v16  ;;  %v2026_v42 = vrot.slane %v1937_v3, %v5654_v28  ;;  %v2030_v43 = vrot.slane %v1937_v3, %v5657_v29 }
 0x112   : > { %v1318_v44 = vcombine.low %v1309_v33, %v1316_v35  ;;  %v2511_v46 = vcombine.low %v2002_v30, %v2006_v32  ;;  %v2512_v47 = vcombine.low %v2010_v34, %v2014_v36  ;;  %v2513_v48 = vcombine.low %v2018_v38, %v2022_v39 }
 0x113   : > { %1772 = vperm.xlu0 %5225, %v1725_v40   ;;  %v1325_v50 = vrot.slane %v1317_v41, %v5660_v31  ;;  %v2514_v51 = vcombine.low %v2026_v42, %v2030_v43  ;;  %v689_v52 = vrot.slane %v5813_v12, %v5636_v22  ;;  %v693_v53 = vrot.slane %v5813_v12, %v5639_v23 }
 0x114   : > { %v1332_v54 = vrot.slane %v1318_v44, %v5660_v31  ;;  %v2521_v55 = vrot.slane %v2511_v46, %v5660_v31  ;;  %v2528_v56 = vrot.slane %v2512_v47, %v5660_v31  ;;  %v2535_v57 = vrot.slane %v2513_v48, %v5660_v31 }
 0x115   : > { %v2542_v59 = vrot.slane %v2514_v51, %v5660_v31  ;;  %v697_v60 = vrot.slane %v5813_v12, %v5642_v24  ;;  %v701_v61 = vrot.slane %v5813_v12, %v5645_v25  ;;  %v705_v62 = vrot.slane %v5813_v12, %v5648_v26 }
 0x116   : > { %v1333_v0 = vcombine.low %v1325_v50, %v1332_v54  ;;  %v2543_v1 = vcombine.low %v2521_v55, %v2528_v56  ;;  %v709_v2 = vrot.slane %v5813_v12, %v5651_v27  ;;  %v713_v3 = vrot.slane %v5813_v12, %v5654_v28  ;;  %v5919_v50 = vpop.xlane.xlu0 %1942 }
 0x117   : > { %v2544_v45 = vcombine.low %v2535_v57, %v2542_v59  ;;  %v717_v4 = vrot.slane %v5813_v12, %v5657_v29  ;;  %v1334_v5 = vcombine.low %v689_v52, %v693_v53  ;;  %v1335_v6 = vcombine.low %v697_v60, %v701_v61 }
 0x118   : > { %1748 = vperm.xlu1 %5226, %v1333_v0   ;;  %v2551_v7 = vrot.slane %v2543_v1, %v5660_v31  ;;  %v1336_v8 = vcombine.low %v705_v62, %v709_v2  ;;  %v2098_v9 = vrot.slane %v1946_v58, %v5636_v22  ;;  %v2102_v10 = vrot.slane %v1946_v58, %v5639_v23 }
 0x119   : > { %v2558_v14 = vrot.slane %v2544_v45, %v5660_v31  ;;  %v1337_v15 = vcombine.low %v713_v3, %v717_v4  ;;  %v1344_v18 = vrot.slane %v1334_v5, %v5660_v31  ;;  %v1351_v19 = vrot.slane %v1335_v6, %v5660_v31 }
 0x11a   : > { %v1358_v12 = vrot.slane %v1336_v8, %v5660_v31  ;;  %v2106_v21 = vrot.slane %v1946_v58, %v5642_v24  ;;  %v2110_v30 = vrot.slane %v1946_v58, %v5645_v25  ;;  %v2114_v32 = vrot.slane %v1946_v58, %v5648_v26 }
 0x11b   : > { %v2559_v37 = vcombine.low %v2551_v7, %v2558_v14  ;;  %v1365_v16 = vrot.slane %v1337_v15, %v5660_v31  ;;  %v1366_v33 = vcombine.low %v1344_v18, %v1351_v19  ;;  %v2118_v34 = vrot.slane %v1946_v58, %v5651_v27 }
 0x11c   : > { %v2122_v35 = vrot.slane %v1946_v58, %v5654_v28  ;;  %v2126_v36 = vrot.slane %v1946_v58, %v5657_v29  ;;  %v2658_v38 = vcombine.low %v2098_v9, %v2102_v10  ;;  %v2659_v39 = vcombine.low %v2106_v21, %v2110_v30  ;;  %v1949_v10 = vpop.xlane.xlu0 %1948 }
 0x11d   : > { %3296 = vperm.xlu0 %5225, %v2559_v37   ;;  %v1367_v40 = vcombine.low %v1358_v12, %v1365_v16  ;;  %v1374_v41 = vrot.slane %v1366_v33, %v5660_v31  ;;  %v2660_v42 = vcombine.low %v2114_v32, %v2118_v34  ;;  %v753_v43 = vrot.slane %v5830_v49, %v5636_v22  ;;  %v5954_v12 = vpop.xlane.xlu1 %1951 }
 0x11e   : > { %v2661_v44 = vcombine.low %v2122_v35, %v2126_v36  ;;  %v2668_v46 = vrot.slane %v2658_v38, %v5660_v31  ;;  %v2675_v47 = vrot.slane %v2659_v39, %v5660_v31  ;;  %v757_v48 = vrot.slane %v5830_v49, %v5639_v23 }
 0x11f   : > { %v1381_v51 = vrot.slane %v1367_v40, %v5660_v31  ;;  %v2682_v52 = vrot.slane %v2660_v42, %v5660_v31  ;;  %v761_v53 = vrot.slane %v5830_v49, %v5642_v24  ;;  %v765_v54 = vrot.slane %v5830_v49, %v5645_v25 }
 0x120   : > { %v2689_v55 = vrot.slane %v2661_v44, %v5660_v31  ;;  %v2690_v56 = vcombine.low %v2668_v46, %v2675_v47  ;;  %v769_v57 = vrot.slane %v5830_v49, %v5648_v26  ;;  %v773_v58 = vrot.slane %v5830_v49, %v5651_v27 }
 0x121   : > { %v1382_v59 = vcombine.low %v1374_v41, %v1381_v51  ;;  %v777_v60 = vrot.slane %v5830_v49, %v5654_v28  ;;  %v781_v61 = vrot.slane %v5830_v49, %v5657_v29  ;;  %v1432_v62 = vcombine.low %v753_v43, %v757_v48 }
 0x122   : > { %v2691_v0 = vcombine.low %v2682_v52, %v2689_v55  ;;  %v2698_v1 = vrot.slane %v2690_v56, %v5660_v31  ;;  %v1433_v2 = vcombine.low %v761_v53, %v765_v54  ;;  %v1434_v3 = vcombine.low %v769_v57, %v773_v58  ;;  %v1958_v55 = vpop.xlane.xlu1 %1957 }
 0x123   : > { %1751 = vperm.xlu1 %5226, %v1382_v59   ;;  %v1435_v45 = vcombine.low %v777_v60, %v781_v61  ;;  %v1442_v4 = vrot.slane %v1432_v62, %v5660_v31  ;;  %v817_v5 = vrot.slane %v5856_v11, %v5636_v22  ;;  %v821_v6 = vrot.slane %v5856_v11, %v5639_v23 }
 0x124   : > { %v2705_v7 = vrot.slane %v2691_v0, %v5660_v31  ;;  %v1449_v49 = vrot.slane %v1433_v2, %v5660_v31  ;;  %v1456_v8 = vrot.slane %v1434_v3, %v5660_v31  ;;  %v825_v9 = vrot.slane %v5856_v11, %v5642_v24 }
 0x125   : > { %v1463_v14 = vrot.slane %v1435_v45, %v5660_v31  ;;  %v829_v15 = vrot.slane %v5856_v11, %v5645_v25  ;;  %v833_v18 = vrot.slane %v5856_v11, %v5648_v26  ;;  %v837_v19 = vrot.slane %v5856_v11, %v5651_v27 }
 0x126   : > { %v2706_v21 = vcombine.low %v2698_v1, %v2705_v7  ;;  %v1464_v30 = vcombine.low %v1442_v4, %v1449_v49  ;;  %v841_v32 = vrot.slane %v5856_v11, %v5654_v28  ;;  %v845_v37 = vrot.slane %v5856_v11, %v5657_v29 }
 0x127   : > { %v1465_v16 = vcombine.low %v1456_v8, %v1463_v14  ;;  %v1530_v33 = vcombine.low %v817_v5, %v821_v6  ;;  %v1531_v34 = vcombine.low %v825_v9, %v829_v15  ;;  %v1532_v35 = vcombine.low %v833_v18, %v837_v19  ;;  %v5992_v14 = vpop.xlane.xlu0 %1954 }
 0x128   : > { %3305 = vperm.xlu0 %5225, %v2706_v21   ;;  %v1472_v36 = vrot.slane %v1464_v30, %v5660_v31  ;;  %v1533_v38 = vcombine.low %v841_v32, %v845_v37  ;;  %v2130_v39 = vrot.slane %v1949_v10, %v5636_v22  ;;  %v2134_v40 = vrot.slane %v1949_v10, %v5639_v23  ;;  %v5998_v30 = vpop.xlane.xlu1 %1963 }
 0x129   : > { %v1479_v41 = vrot.slane %v1465_v16, %v5660_v31  ;;  %v1540_v42 = vrot.slane %v1530_v33, %v5660_v31  ;;  %v1547_v43 = vrot.slane %v1531_v34, %v5660_v31  ;;  %v1554_v11 = vrot.slane %v1532_v35, %v5660_v31 }
 0x12a   : > { %v1561_v44 = vrot.slane %v1533_v38, %v5660_v31  ;;  %v2138_v46 = vrot.slane %v1949_v10, %v5642_v24  ;;  %v2142_v47 = vrot.slane %v1949_v10, %v5645_v25  ;;  %v2146_v48 = vrot.slane %v1949_v10, %v5648_v26 }
 0x12b   : > { %v1480_v51 = vcombine.low %v1472_v36, %v1479_v41  ;;  %v1562_v52 = vcombine.low %v1540_v42, %v1547_v43  ;;  %v2150_v53 = vrot.slane %v1949_v10, %v5651_v27  ;;  %v2154_v54 = vrot.slane %v1949_v10, %v5654_v28 }
 0x12c   : > { %v1563_v56 = vcombine.low %v1554_v11, %v1561_v44  ;;  %v2158_v57 = vrot.slane %v1949_v10, %v5657_v29  ;;  %v2707_v58 = vcombine.low %v2130_v39, %v2134_v40  ;;  %v2708_v59 = vcombine.low %v2138_v46, %v2142_v47 }
 0x12d   : > { %1757 = vperm.xlu1 %5226, %v1480_v51   ;;  %v1570_v60 = vrot.slane %v1562_v52, %v5660_v31  ;;  %v2709_v61 = vcombine.low %v2146_v48, %v2150_v53  ;;  %v881_v62 = vrot.slane %v5872_v63, %v5636_v22  ;;  %v885_v0 = vrot.slane %v5872_v63, %v5639_v23  ;;  %v6014_v52 = vpop.xlane.xlu0 %1960 }
 0x12e   : > { %v1577_v1 = vrot.slane %v1563_v56, %v5660_v31  ;;  %v2710_v2 = vcombine.low %v2154_v54, %v2158_v57  ;;  %v2717_v3 = vrot.slane %v2707_v58, %v5660_v31  ;;  %v2724_v45 = vrot.slane %v2708_v59, %v5660_v31  ;;  %v6017_v58 = vpop.xlane.xlu1 %1969 }
 0x12f   : > { %v2731_v4 = vrot.slane %v2709_v61, %v5660_v31  ;;  %v889_v5 = vrot.slane %v5872_v63, %v5642_v24  ;;  %v893_v6 = vrot.slane %v5872_v63, %v5645_v25  ;;  %v897_v7 = vrot.slane %v5872_v63, %v5648_v26 }
 0x130   : > { %v1578_v49 = vcombine.low %v1570_v60, %v1577_v1  ;;  %v2738_v8 = vrot.slane %v2710_v2, %v5660_v31  ;;  %v2739_v9 = vcombine.low %v2717_v3, %v2724_v45  ;;  %v901_v10 = vrot.slane %v5872_v63, %v5651_v27 }
 0x131   : > { %v905_v15 = vrot.slane %v5872_v63, %v5654_v28  ;;  %v909_v18 = vrot.slane %v5872_v63, %v5657_v29  ;;  %v1628_v19 = vcombine.low %v881_v62, %v885_v0  ;;  %v1629_v21 = vcombine.low %v889_v5, %v893_v6 }
 0x132   : > { %1763 = vperm.xlu1 %5226, %v1578_v49   ;;  %v2740_v32 = vcombine.low %v2731_v4, %v2738_v8  ;;  %v2747_v37 = vrot.slane %v2739_v9, %v5660_v31  ;;  %v1630_v16 = vcombine.low %v897_v7, %v901_v10  ;;  %v2226_v33 = vrot.slane %v1958_v55, %v5636_v22 }
 0x133   : > { %v1631_v34 = vcombine.low %v905_v15, %v909_v18  ;;  %v1638_v35 = vrot.slane %v1628_v19, %v5660_v31  ;;  %v1645_v36 = vrot.slane %v1629_v21, %v5660_v31  ;;  %v2230_v38 = vrot.slane %v1958_v55, %v5639_v23  ;;  %v6040_v19 = vpop.xlane.xlu0 %1966 }
 0x134   : > { %v2754_v63 = vrot.slane %v2740_v32, %v5660_v31  ;;  %v1652_v39 = vrot.slane %v1630_v16, %v5660_v31  ;;  %v2234_v40 = vrot.slane %v1958_v55, %v5642_v24  ;;  %v2238_v41 = vrot.slane %v1958_v55, %v5645_v25 }
 0x135   : > { %v1659_v42 = vrot.slane %v1631_v34, %v5660_v31  ;;  %v1660_v43 = vcombine.low %v1638_v35, %v1645_v36  ;;  %v2242_v11 = vrot.slane %v1958_v55, %v5648_v26  ;;  %v2246_v44 = vrot.slane %v1958_v55, %v5651_v27 }
 0x136   : > { %v2755_v46 = vcombine.low %v2747_v37, %v2754_v63  ;;  %v2250_v47 = vrot.slane %v1958_v55, %v5654_v28  ;;  %v2254_v48 = vrot.slane %v1958_v55, %v5657_v29  ;;  %v2854_v51 = vcombine.low %v2226_v33, %v2230_v38  ;;  %v6047_v33 = vpop.xlane.xlu1 %1975 }
 0x137   : > { %v1661_v53 = vcombine.low %v1652_v39, %v1659_v42  ;;  %v1668_v54 = vrot.slane %v1660_v43, %v5660_v31  ;;  %v2855_v56 = vcombine.low %v2234_v40, %v2238_v41  ;;  %v2856_v57 = vcombine.low %v2242_v11, %v2246_v44 }
 0x138   : > { %3308 = vperm.xlu0 %5225, %v2755_v46   ;;  %v2857_v59 = vcombine.low %v2250_v47, %v2254_v48  ;;  %v2864_v60 = vrot.slane %v2854_v51, %v5660_v31  ;;  %v2034_v61 = vrot.slane %v5899_v13, %v5636_v22  ;;  %v2038_v55 = vrot.slane %v5899_v13, %v5639_v23 }
 0x139   : > { %v1675_v62 = vrot.slane %v1661_v53, %v5660_v31  ;;  %v2871_v0 = vrot.slane %v2855_v56, %v5660_v31  ;;  %v2878_v1 = vrot.slane %v2856_v57, %v5660_v31  ;;  %v2042_v2 = vrot.slane %v5899_v13, %v5642_v24  ;;  %v6071_v57 = vpop.xlane.xlu0 %1972 }
 0x13a   : > { %v2885_v3 = vrot.slane %v2857_v59, %v5660_v31  ;;  %v2046_v45 = vrot.slane %v5899_v13, %v5645_v25  ;;  %v2050_v4 = vrot.slane %v5899_v13, %v5648_v26  ;;  %v2054_v5 = vrot.slane %v5899_v13, %v5651_v27 }
 0x13b   : > { %v1676_v6 = vcombine.low %v1668_v54, %v1675_v62  ;;  %v2886_v7 = vcombine.low %v2864_v60, %v2871_v0  ;;  %v2058_v49 = vrot.slane %v5899_v13, %v5654_v28  ;;  %v2062_v8 = vrot.slane %v5899_v13, %v5657_v29 }
 0x13c   : > { %v2887_v9 = vcombine.low %v2878_v1, %v2885_v3  ;;  %v2560_v10 = vcombine.low %v2034_v61, %v2038_v55  ;;  %v2561_v15 = vcombine.low %v2042_v2, %v2046_v45  ;;  %v2562_v18 = vcombine.low %v2050_v4, %v2054_v5  ;;  %v6076_v55 = vpop.xlane.xlu1 %1981 }
 0x13d   : > { %1769 = vperm.xlu1 %5226, %v1676_v6   ;;  %v2894_v21 = vrot.slane %v2886_v7, %v5660_v31  ;;  %v2563_v32 = vcombine.low %v2058_v49, %v2062_v8  ;;  %v2066_v37 = vrot.slane %v5919_v50, %v5636_v22  ;;  %v2070_v16 = vrot.slane %v5919_v50, %v5639_v23 }
 0x13e   : > { %v2901_v13 = vrot.slane %v2887_v9, %v5660_v31  ;;  %v2570_v34 = vrot.slane %v2560_v10, %v5660_v31  ;;  %v2577_v35 = vrot.slane %v2561_v15, %v5660_v31  ;;  %v2584_v36 = vrot.slane %v2562_v18, %v5660_v31 }
 0x13f   : > { %v2591_v38 = vrot.slane %v2563_v32, %v5660_v31  ;;  %v2074_v63 = vrot.slane %v5919_v50, %v5642_v24  ;;  %v2078_v39 = vrot.slane %v5919_v50, %v5645_v25  ;;  %v2082_v40 = vrot.slane %v5919_v50, %v5648_v26 }
 0x140   : > { %v2902_v41 = vcombine.low %v2894_v21, %v2901_v13  ;;  %v2592_v42 = vcombine.low %v2570_v34, %v2577_v35  ;;  %v2086_v43 = vrot.slane %v5919_v50, %v5651_v27  ;;  %v2090_v11 = vrot.slane %v5919_v50, %v5654_v28  ;;  %v6099_v13 = vpop.xlane.xlu0 %1978 }
 0x141   : > { %v2593_v44 = vcombine.low %v2584_v36, %v2591_v38  ;;  %v2094_v46 = vrot.slane %v5919_v50, %v5657_v29  ;;  %v2609_v47 = vcombine.low %v2066_v37, %v2070_v16  ;;  %v2610_v48 = vcombine.low %v2074_v63, %v2078_v39  ;;  %v3474_v38 = vpop.xlane.xlu1 %3473 }
 0x142   : > { %3317 = vperm.xlu0 %5225, %v2902_v41   ;;  %v2600_v51 = vrot.slane %v2592_v42, %v5660_v31  ;;  %v2611_v53 = vcombine.low %v2082_v40, %v2086_v43  ;;  %v2162_v54 = vrot.slane %v5954_v12, %v5636_v22  ;;  %v2166_v56 = vrot.slane %v5954_v12, %v5639_v23 }
 0x143   : > { %v2607_v59 = vrot.slane %v2593_v44, %v5660_v31  ;;  %v2612_v60 = vcombine.low %v2090_v11, %v2094_v46  ;;  %v2619_v61 = vrot.slane %v2609_v47, %v5660_v31  ;;  %v2626_v50 = vrot.slane %v2610_v48, %v5660_v31 }
 0x144   : > { %v2633_v62 = vrot.slane %v2611_v53, %v5660_v31  ;;  %v2170_v0 = vrot.slane %v5954_v12, %v5642_v24  ;;  %v2174_v1 = vrot.slane %v5954_v12, %v5645_v25  ;;  %v2178_v2 = vrot.slane %v5954_v12, %v5648_v26 }
 0x145   : > { %v2608_v3 = vcombine.low %v2600_v51, %v2607_v59  ;;  %v2640_v45 = vrot.slane %v2612_v60, %v5660_v31  ;;  %v2641_v4 = vcombine.low %v2619_v61, %v2626_v50  ;;  %v2182_v5 = vrot.slane %v5954_v12, %v5651_v27 }
 0x146   : > { %v2186_v6 = vrot.slane %v5954_v12, %v5654_v28  ;;  %v2190_v7 = vrot.slane %v5954_v12, %v5657_v29  ;;  %v2756_v49 = vcombine.low %v2162_v54, %v2166_v56  ;;  %v2757_v8 = vcombine.low %v2170_v0, %v2174_v1 }
 0x147   : > { %3299 = vperm.xlu1 %5226, %v2608_v3   ;;  %v2642_v9 = vcombine.low %v2633_v62, %v2640_v45  ;;  %v2649_v10 = vrot.slane %v2641_v4, %v5660_v31  ;;  %v2758_v15 = vcombine.low %v2178_v2, %v2182_v5  ;;  %v2194_v18 = vrot.slane %v5992_v14, %v5636_v22  ;;  %v3477_v62 = vpop.xlane.xlu0 %3476 }
 0x148   : > { %v2759_v21 = vcombine.low %v2186_v6, %v2190_v7  ;;  %v2766_v32 = vrot.slane %v2756_v49, %v5660_v31  ;;  %v2773_v37 = vrot.slane %v2757_v8, %v5660_v31  ;;  %v2198_v16 = vrot.slane %v5992_v14, %v5639_v23 }
 0x149   : > { %v2656_v12 = vrot.slane %v2642_v9, %v5660_v31  ;;  %v2780_v34 = vrot.slane %v2758_v15, %v5660_v31  ;;  %v2202_v35 = vrot.slane %v5992_v14, %v5642_v24  ;;  %v2206_v36 = vrot.slane %v5992_v14, %v5645_v25 }
 0x14a   : > { %v2787_v63 = vrot.slane %v2759_v21, %v5660_v31  ;;  %v2788_v39 = vcombine.low %v2766_v32, %v2773_v37  ;;  %v2210_v40 = vrot.slane %v5992_v14, %v5648_v26  ;;  %v2214_v41 = vrot.slane %v5992_v14, %v5651_v27 }
 0x14b   : > { %v2657_v42 = vcombine.low %v2649_v10, %v2656_v12  ;;  %v2218_v43 = vrot.slane %v5992_v14, %v5654_v28  ;;  %v2222_v11 = vrot.slane %v5992_v14, %v5657_v29  ;;  %v2805_v44 = vcombine.low %v2194_v18, %v2198_v16 }
 0x14c   : > { %v2789_v46 = vcombine.low %v2780_v34, %v2787_v63  ;;  %v2796_v47 = vrot.slane %v2788_v39, %v5660_v31  ;;  %v2806_v48 = vcombine.low %v2202_v35, %v2206_v36  ;;  %v2807_v51 = vcombine.low %v2210_v40, %v2214_v41  ;;  %v3483_v34 = vpop.xlane.xlu1 %3482 }
 0x14d   : > { %3302 = vperm.xlu1 %5226, %v2657_v42   ;;  %v2808_v53 = vcombine.low %v2218_v43, %v2222_v11  ;;  %v2815_v54 = vrot.slane %v2805_v44, %v5660_v31  ;;  %v3539_v56 = vrot.slane %v3474_v38, %v5636_v22  ;;  %v3543_v59 = vrot.slane %v3474_v38, %v5639_v23 }
 0x14e   : > { %v2803_v60 = vrot.slane %v2789_v46, %v5660_v31  ;;  %v2822_v61 = vrot.slane %v2806_v48, %v5660_v31  ;;  %v2829_v14 = vrot.slane %v2807_v51, %v5660_v31  ;;  %v3547_v50 = vrot.slane %v3474_v38, %v5642_v24 }
 0x14f   : > { %v2836_v0 = vrot.slane %v2808_v53, %v5660_v31  ;;  %v3551_v1 = vrot.slane %v3474_v38, %v5645_v25  ;;  %v3555_v2 = vrot.slane %v3474_v38, %v5648_v26  ;;  %v3559_v3 = vrot.slane %v3474_v38, %v5651_v27 }
 0x150   : > { %v2804_v45 = vcombine.low %v2796_v47, %v2803_v60  ;;  %v2837_v4 = vcombine.low %v2815_v54, %v2822_v61  ;;  %v3563_v5 = vrot.slane %v3474_v38, %v5654_v28  ;;  %v3567_v6 = vrot.slane %v3474_v38, %v5657_v29  ;;  %v3480_v61 = vpop.xlane.xlu0 %3479 }
 0x151   : > { %v2838_v7 = vcombine.low %v2829_v14, %v2836_v0  ;;  %v4048_v49 = vcombine.low %v3539_v56, %v3543_v59  ;;  %v4049_v8 = vcombine.low %v3547_v50, %v3551_v1  ;;  %v4050_v9 = vcombine.low %v3555_v2, %v3559_v3 }
 0x152   : > { %3311 = vperm.xlu1 %5226, %v2804_v45   ;;  %v2845_v10 = vrot.slane %v2837_v4, %v5660_v31  ;;  %v4051_v15 = vcombine.low %v3563_v5, %v3567_v6  ;;  %v3571_v18 = vrot.slane %v3477_v62, %v5636_v22  ;;  %v3575_v21 = vrot.slane %v3477_v62, %v5639_v23 }
 0x153   : > { %v2852_v32 = vrot.slane %v2838_v7, %v5660_v31  ;;  %v4058_v37 = vrot.slane %v4048_v49, %v5660_v31  ;;  %v4065_v16 = vrot.slane %v4049_v8, %v5660_v31  ;;  %v4072_v12 = vrot.slane %v4050_v9, %v5660_v31 }
 0x154   : > { %v4079_v35 = vrot.slane %v4051_v15, %v5660_v31  ;;  %v3579_v36 = vrot.slane %v3477_v62, %v5642_v24  ;;  %v3583_v38 = vrot.slane %v3477_v62, %v5645_v25  ;;  %v3587_v63 = vrot.slane %v3477_v62, %v5648_v26 }
 0x155   : > { %v2853_v39 = vcombine.low %v2845_v10, %v2852_v32  ;;  %v4080_v40 = vcombine.low %v4058_v37, %v4065_v16  ;;  %v3591_v41 = vrot.slane %v3477_v62, %v5651_v27  ;;  %v3595_v42 = vrot.slane %v3477_v62, %v5654_v28 }
 0x156   : > { %v4081_v43 = vcombine.low %v4072_v12, %v4079_v35  ;;  %v3599_v11 = vrot.slane %v3477_v62, %v5657_v29  ;;  %v4097_v44 = vcombine.low %v3571_v18, %v3575_v21  ;;  %v4098_v46 = vcombine.low %v3579_v36, %v3583_v38  ;;  %v3489_v35 = vpop.xlane.xlu1 %3488 }
 0x157   : > { %3314 = vperm.xlu1 %5226, %v2853_v39   ;;  %v4088_v47 = vrot.slane %v4080_v40, %v5660_v31  ;;  %v4099_v48 = vcombine.low %v3587_v63, %v3591_v41  ;;  %v3635_v51 = vrot.slane %v3483_v34, %v5636_v22  ;;  %v3639_v53 = vrot.slane %v3483_v34, %v5639_v23 }
 0x158   : > { %v4095_v54 = vrot.slane %v4081_v43, %v5660_v31  ;;  %v4100_v56 = vcombine.low %v3595_v42, %v3599_v11  ;;  %v4107_v59 = vrot.slane %v4097_v44, %v5660_v31  ;;  %v4114_v60 = vrot.slane %v4098_v46, %v5660_v31 }
 0x159   : > { %v4121_v14 = vrot.slane %v4099_v48, %v5660_v31  ;;  %v3643_v50 = vrot.slane %v3483_v34, %v5642_v24  ;;  %v3647_v62 = vrot.slane %v3483_v34, %v5645_v25  ;;  %v3651_v0 = vrot.slane %v3483_v34, %v5648_v26 }
 0x15a   : > { %v4096_v1 = vcombine.low %v4088_v47, %v4095_v54  ;;  %v4128_v2 = vrot.slane %v4100_v56, %v5660_v31  ;;  %v4129_v3 = vcombine.low %v4107_v59, %v4114_v60  ;;  %v3655_v45 = vrot.slane %v3483_v34, %v5651_v27 }
 0x15b   : > { %v3659_v4 = vrot.slane %v3483_v34, %v5654_v28  ;;  %v3663_v5 = vrot.slane %v3483_v34, %v5657_v29  ;;  %v4195_v6 = vcombine.low %v3635_v51, %v3639_v53  ;;  %v4196_v7 = vcombine.low %v3643_v50, %v3647_v62 }
 0x15c   : > { %4833 = vperm.xlu1 %5226, %v4096_v1   ;;  %v4130_v49 = vcombine.low %v4121_v14, %v4128_v2  ;;  %v4137_v8 = vrot.slane %v4129_v3, %v5660_v31  ;;  %v4197_v9 = vcombine.low %v3651_v0, %v3655_v45  ;;  %v3603_v10 = vrot.slane %v3480_v61, %v5636_v22  ;;  %v3486_v14 = vpop.xlane.xlu0 %3485 }
 0x15d   : > { %v4198_v15 = vcombine.low %v3659_v4, %v3663_v5  ;;  %v4205_v18 = vrot.slane %v4195_v6, %v5660_v31  ;;  %v4212_v21 = vrot.slane %v4196_v7, %v5660_v31  ;;  %v3607_v32 = vrot.slane %v3480_v61, %v5639_v23 }
 0x15e   : > { %v4144_v37 = vrot.slane %v4130_v49, %v5660_v31  ;;  %v4219_v16 = vrot.slane %v4197_v9, %v5660_v31  ;;  %v3611_v12 = vrot.slane %v3480_v61, %v5642_v24  ;;  %v3615_v34 = vrot.slane %v3480_v61, %v5645_v25 }
 0x15f   : > { %v4226_v36 = vrot.slane %v4198_v15, %v5660_v31  ;;  %v4227_v38 = vcombine.low %v4205_v18, %v4212_v21  ;;  %v3619_v63 = vrot.slane %v3480_v61, %v5648_v26  ;;  %v3623_v39 = vrot.slane %v3480_v61, %v5651_v27 }
 0x160   : > { %v4145_v40 = vcombine.low %v4137_v8, %v4144_v37  ;;  %v3627_v41 = vrot.slane %v3480_v61, %v5654_v28  ;;  %v3631_v42 = vrot.slane %v3480_v61, %v5657_v29  ;;  %v4146_v43 = vcombine.low %v3603_v10, %v3607_v32 }
 0x161   : > { %v4228_v11 = vcombine.low %v4219_v16, %v4226_v36  ;;  %v4235_v44 = vrot.slane %v4227_v38, %v5660_v31  ;;  %v4147_v46 = vcombine.low %v3611_v12, %v3615_v34  ;;  %v4148_v47 = vcombine.low %v3619_v63, %v3623_v39  ;;  %v3495_v16 = vpop.xlane.xlu1 %3494 }
 0x162   : > { %4836 = vperm.xlu0 %5225, %v4145_v40   ;;  %v4149_v48 = vcombine.low %v3627_v41, %v3631_v42  ;;  %v4156_v51 = vrot.slane %v4146_v43, %v5660_v31  ;;  %v3699_v53 = vrot.slane %v3489_v35, %v5636_v22  ;;  %v3703_v54 = vrot.slane %v3489_v35, %v5639_v23 }
 0x163   : > { %v4242_v56 = vrot.slane %v4228_v11, %v5660_v31  ;;  %v4163_v59 = vrot.slane %v4147_v46, %v5660_v31  ;;  %v4170_v60 = vrot.slane %v4148_v47, %v5660_v31  ;;  %v3707_v61 = vrot.slane %v3489_v35, %v5642_v24 }
 0x164   : > { %v4177_v50 = vrot.slane %v4149_v48, %v5660_v31  ;;  %v3711_v62 = vrot.slane %v3489_v35, %v5645_v25  ;;  %v3715_v0 = vrot.slane %v3489_v35, %v5648_v26  ;;  %v3719_v1 = vrot.slane %v3489_v35, %v5651_v27 }
 0x165   : > { %v4243_v2 = vcombine.low %v4235_v44, %v4242_v56  ;;  %v4178_v3 = vcombine.low %v4156_v51, %v4163_v59  ;;  %v3723_v45 = vrot.slane %v3489_v35, %v5654_v28  ;;  %v3727_v4 = vrot.slane %v3489_v35, %v5657_v29  ;;  %v3492_v59 = vpop.xlane.xlu0 %3491 }
 0x166   : > { %v4179_v5 = vcombine.low %v4170_v60, %v4177_v50  ;;  %v4293_v6 = vcombine.low %v3699_v53, %v3703_v54  ;;  %v4294_v7 = vcombine.low %v3707_v61, %v3711_v62  ;;  %v4295_v49 = vcombine.low %v3715_v0, %v3719_v1 }
 0x167   : > { %4842 = vperm.xlu0 %5225, %v4243_v2   ;;  %v4186_v8 = vrot.slane %v4178_v3, %v5660_v31  ;;  %v4296_v9 = vcombine.low %v3723_v45, %v3727_v4  ;;  %v3667_v10 = vrot.slane %v3486_v14, %v5636_v22  ;;  %v3671_v15 = vrot.slane %v3486_v14, %v5639_v23 }
 0x168   : > { %v4193_v18 = vrot.slane %v4179_v5, %v5660_v31  ;;  %v4303_v21 = vrot.slane %v4293_v6, %v5660_v31  ;;  %v4310_v32 = vrot.slane %v4294_v7, %v5660_v31  ;;  %v4317_v37 = vrot.slane %v4295_v49, %v5660_v31 }
 0x169   : > { %v4324_v12 = vrot.slane %v4296_v9, %v5660_v31  ;;  %v3675_v34 = vrot.slane %v3486_v14, %v5642_v24  ;;  %v3679_v35 = vrot.slane %v3486_v14, %v5645_v25  ;;  %v3683_v36 = vrot.slane %v3486_v14, %v5648_v26 }
 0x16a   : > { %v4194_v38 = vcombine.low %v4186_v8, %v4193_v18  ;;  %v4325_v63 = vcombine.low %v4303_v21, %v4310_v32  ;;  %v3687_v39 = vrot.slane %v3486_v14, %v5651_v27  ;;  %v3691_v40 = vrot.slane %v3486_v14, %v5654_v28 }
 0x16b   : > { %v4326_v41 = vcombine.low %v4317_v37, %v4324_v12  ;;  %v3695_v42 = vrot.slane %v3486_v14, %v5657_v29  ;;  %v4244_v43 = vcombine.low %v3667_v10, %v3671_v15  ;;  %v4245_v11 = vcombine.low %v3675_v34, %v3679_v35 }
 0x16c   : > { %4839 = vperm.xlu1 %5226, %v4194_v38   ;;  %v4333_v44 = vrot.slane %v4325_v63, %v5660_v31  ;;  %v4246_v46 = vcombine.low %v3683_v36, %v3687_v39  ;;  %v3763_v47 = vrot.slane %v3495_v16, %v5636_v22  ;;  %v3767_v48 = vrot.slane %v3495_v16, %v5639_v23  ;;  %v6226_v38 = vpop.xlane.xlu1 %3500 }
 0x16d   : > { %v4340_v51 = vrot.slane %v4326_v41, %v5660_v31  ;;  %v4247_v53 = vcombine.low %v3691_v40, %v3695_v42  ;;  %v4254_v54 = vrot.slane %v4244_v43, %v5660_v31  ;;  %v4261_v56 = vrot.slane %v4245_v11, %v5660_v31 }
 0x16e   : > { %v4268_v60 = vrot.slane %v4246_v46, %v5660_v31  ;;  %v3771_v61 = vrot.slane %v3495_v16, %v5642_v24  ;;  %v3775_v14 = vrot.slane %v3495_v16, %v5645_v25  ;;  %v3779_v50 = vrot.slane %v3495_v16, %v5648_v26 }
 0x16f   : > { %v4341_v62 = vcombine.low %v4333_v44, %v4340_v51  ;;  %v4275_v0 = vrot.slane %v4247_v53, %v5660_v31  ;;  %v4276_v1 = vcombine.low %v4254_v54, %v4261_v56  ;;  %v3783_v2 = vrot.slane %v3495_v16, %v5651_v27 }
 0x170   : > { %v3787_v3 = vrot.slane %v3495_v16, %v5654_v28  ;;  %v3791_v45 = vrot.slane %v3495_v16, %v5657_v29  ;;  %v4391_v4 = vcombine.low %v3763_v47, %v3767_v48  ;;  %v4392_v5 = vcombine.low %v3771_v61, %v3775_v14  ;;  %v6242_v14 = vpop.xlane.xlu1 %3506 }
 0x171   : > { %4848 = vperm.xlu0 %5225, %v4341_v62   ;;  %v4277_v6 = vcombine.low %v4268_v60, %v4275_v0  ;;  %v4284_v7 = vrot.slane %v4276_v1, %v5660_v31  ;;  %v4393_v49 = vcombine.low %v3779_v50, %v3783_v2  ;;  %v3731_v8 = vrot.slane %v3492_v59, %v5636_v22  ;;  %v3498_v60 = vpop.xlane.xlu0 %3497 }
 0x172   : > { %v4394_v9 = vcombine.low %v3787_v3, %v3791_v45  ;;  %v4401_v10 = vrot.slane %v4391_v4, %v5660_v31  ;;  %v4408_v15 = vrot.slane %v4392_v5, %v5660_v31  ;;  %v3735_v18 = vrot.slane %v3492_v59, %v5639_v23 }
 0x173   : > { %v4291_v21 = vrot.slane %v4277_v6, %v5660_v31  ;;  %v4415_v32 = vrot.slane %v4393_v49, %v5660_v31  ;;  %v3739_v37 = vrot.slane %v3492_v59, %v5642_v24  ;;  %v3743_v16 = vrot.slane %v3492_v59, %v5645_v25 }
 0x174   : > { %v4422_v12 = vrot.slane %v4394_v9, %v5660_v31  ;;  %v4423_v34 = vcombine.low %v4401_v10, %v4408_v15  ;;  %v3747_v35 = vrot.slane %v3492_v59, %v5648_v26  ;;  %v3751_v36 = vrot.slane %v3492_v59, %v5651_v27 }
 0x175   : > { %v4292_v63 = vcombine.low %v4284_v7, %v4291_v21  ;;  %v3755_v39 = vrot.slane %v3492_v59, %v5654_v28  ;;  %v3759_v40 = vrot.slane %v3492_v59, %v5657_v29  ;;  %v4342_v41 = vcombine.low %v3731_v8, %v3735_v18 }
 0x176   : > { %v4424_v42 = vcombine.low %v4415_v32, %v4422_v12  ;;  %v4431_v43 = vrot.slane %v4423_v34, %v5660_v31  ;;  %v4343_v11 = vcombine.low %v3739_v37, %v3743_v16  ;;  %v4344_v44 = vcombine.low %v3747_v35, %v3751_v36  ;;  %v6261_v32 = vpop.xlane.xlu1 %3512 }
 0x177   : > { %4845 = vperm.xlu1 %5226, %v4292_v63   ;;  %v4345_v46 = vcombine.low %v3755_v39, %v3759_v40  ;;  %v4352_v47 = vrot.slane %v4342_v41, %v5660_v31  ;;  %v2258_v48 = vrot.slane %v6014_v52, %v5636_v22  ;;  %v2262_v51 = vrot.slane %v6014_v52, %v5639_v23 }
 0x178   : > { %v4438_v53 = vrot.slane %v4424_v42, %v5660_v31  ;;  %v4359_v54 = vrot.slane %v4343_v11, %v5660_v31  ;;  %v4366_v56 = vrot.slane %v4344_v44, %v5660_v31  ;;  %v2266_v59 = vrot.slane %v6014_v52, %v5642_v24 }
 0x179   : > { %v4373_v61 = vrot.slane %v4345_v46, %v5660_v31  ;;  %v2270_v50 = vrot.slane %v6014_v52, %v5645_v25  ;;  %v2274_v62 = vrot.slane %v6014_v52, %v5648_v26  ;;  %v2278_v0 = vrot.slane %v6014_v52, %v5651_v27 }
 0x17a   : > { %v4439_v1 = vcombine.low %v4431_v43, %v4438_v53  ;;  %v4374_v2 = vcombine.low %v4352_v47, %v4359_v54  ;;  %v2282_v3 = vrot.slane %v6014_v52, %v5654_v28  ;;  %v2286_v45 = vrot.slane %v6014_v52, %v5657_v29 }
 0x17b   : > { %v4375_v4 = vcombine.low %v4366_v56, %v4373_v61  ;;  %v2903_v5 = vcombine.low %v2258_v48, %v2262_v51  ;;  %v2904_v6 = vcombine.low %v2266_v59, %v2270_v50  ;;  %v2905_v7 = vcombine.low %v2274_v62, %v2278_v0  ;;  %v6275_v48 = vpop.xlane.xlu1 %3518 }
 0x17c   : > { %4854 = vperm.xlu0 %5225, %v4439_v1   ;;  %v4382_v49 = vrot.slane %v4374_v2, %v5660_v31  ;;  %v2906_v8 = vcombine.low %v2282_v3, %v2286_v45  ;;  %v3795_v9 = vrot.slane %v3498_v60, %v5636_v22  ;;  %v3799_v10 = vrot.slane %v3498_v60, %v5639_v23 }
 0x17d   : > { %v4389_v15 = vrot.slane %v4375_v4, %v5660_v31  ;;  %v2913_v18 = vrot.slane %v2903_v5, %v5660_v31  ;;  %v2920_v21 = vrot.slane %v2904_v6, %v5660_v31  ;;  %v2927_v52 = vrot.slane %v2905_v7, %v5660_v31 }
 0x17e   : > { %v2934_v37 = vrot.slane %v2906_v8, %v5660_v31  ;;  %v3803_v16 = vrot.slane %v3498_v60, %v5642_v24  ;;  %v3807_v12 = vrot.slane %v3498_v60, %v5645_v25  ;;  %v3811_v34 = vrot.slane %v3498_v60, %v5648_v26 }
 0x17f   : > { %v4390_v35 = vcombine.low %v4382_v49, %v4389_v15  ;;  %v2935_v36 = vcombine.low %v2913_v18, %v2920_v21  ;;  %v3815_v63 = vrot.slane %v3498_v60, %v5651_v27  ;;  %v3819_v39 = vrot.slane %v3498_v60, %v5654_v28  ;;  %v6294_v6 = vpop.permute.xlu1 %1730 }
 0x180   : > { %v2936_v40 = vcombine.low %v2927_v52, %v2934_v37  ;;  %v3823_v41 = vrot.slane %v3498_v60, %v5657_v29  ;;  %v4440_v42 = vcombine.low %v3795_v9, %v3799_v10  ;;  %v4441_v43 = vcombine.low %v3803_v16, %v3807_v12 }
 0x181   : > { %4851 = vperm.xlu1 %5226, %v4390_v35   ;;  %v2943_v11 = vrot.slane %v2935_v36, %v5660_v31  ;;  %v4442_v44 = vcombine.low %v3811_v34, %v3815_v63  ;;  %v2290_v46 = vrot.slane %v5998_v30, %v5636_v22  ;;  %v2294_v47 = vrot.slane %v5998_v30, %v5639_v23 }
 0x182   : > { %v2950_v51 = vrot.slane %v2936_v40, %v5660_v31  ;;  %v4443_v53 = vcombine.low %v3819_v39, %v3823_v41  ;;  %v4450_v54 = vrot.slane %v4440_v42, %v5660_v31  ;;  %v4457_v56 = vrot.slane %v4441_v43, %v5660_v31 }
 0x183   : > { %v4464_v59 = vrot.slane %v4442_v44, %v5660_v31  ;;  %v2298_v60 = vrot.slane %v5998_v30, %v5642_v24  ;;  %v2302_v61 = vrot.slane %v5998_v30, %v5645_v25  ;;  %v2306_v50 = vrot.slane %v5998_v30, %v5648_v26 }
 0x184   : > { %v2951_v62 = vcombine.low %v2943_v11, %v2950_v51  ;;  %v4471_v0 = vrot.slane %v4443_v53, %v5660_v31  ;;  %v4472_v1 = vcombine.low %v4450_v54, %v4457_v56  ;;  %v2310_v2 = vrot.slane %v5998_v30, %v5651_v27 }
 0x185   : > { %v2314_v3 = vrot.slane %v5998_v30, %v5654_v28  ;;  %v2318_v45 = vrot.slane %v5998_v30, %v5657_v29  ;;  %v2952_v4 = vcombine.low %v2290_v46, %v2294_v47  ;;  %v2953_v5 = vcombine.low %v2298_v60, %v2302_v61  ;;  %v6319_v46 = vpop.permute.xlu1 %1733  ;;  %v3504_v61 = vpop.xlane.xlu0 %3503 }
 0x186   : > { %3320 = vperm.xlu1 %5226, %v2951_v62   ;;  %v4473_v7 = vcombine.low %v4464_v59, %v4471_v0  ;;  %v4480_v49 = vrot.slane %v4472_v1, %v5660_v31  ;;  %v2954_v8 = vcombine.low %v2306_v50, %v2310_v2  ;;  %v3827_v9 = vrot.slane %v6226_v38, %v5636_v22 }
 0x187   : > { %v2955_v10 = vcombine.low %v2314_v3, %v2318_v45  ;;  %v2962_v15 = vrot.slane %v2952_v4, %v5660_v31  ;;  %v2969_v18 = vrot.slane %v2953_v5, %v5660_v31  ;;  %v3831_v30 = vrot.slane %v6226_v38, %v5639_v23 }
 0x188   : > { %v4487_v21 = vrot.slane %v4473_v7, %v5660_v31  ;;  %v2976_v52 = vrot.slane %v2954_v8, %v5660_v31  ;;  %v3835_v37 = vrot.slane %v6226_v38, %v5642_v24  ;;  %v3839_v16 = vrot.slane %v6226_v38, %v5645_v25 }
 0x189   : > { %v2983_v12 = vrot.slane %v2955_v10, %v5660_v31  ;;  %v2984_v34 = vcombine.low %v2962_v15, %v2969_v18  ;;  %v3843_v35 = vrot.slane %v6226_v38, %v5648_v26  ;;  %v3847_v36 = vrot.slane %v6226_v38, %v5651_v27 }
 0x18a   : > { %v4488_v63 = vcombine.low %v4480_v49, %v4487_v21  ;;  %v3851_v39 = vrot.slane %v6226_v38, %v5654_v28  ;;  %v3855_v40 = vrot.slane %v6226_v38, %v5657_v29  ;;  %v4489_v41 = vcombine.low %v3827_v9, %v3831_v30  ;;  %v6345_v30 = vpop.permute.xlu1 %1736 }
 0x18b   : > { %v2985_v42 = vcombine.low %v2976_v52, %v2983_v12  ;;  %v2992_v43 = vrot.slane %v2984_v34, %v5660_v31  ;;  %v4490_v11 = vcombine.low %v3835_v37, %v3839_v16  ;;  %v4491_v44 = vcombine.low %v3843_v35, %v3847_v36 }
 0x18c   : > { %4857 = vperm.xlu0 %5225, %v4488_v63   ;;  %v4492_v47 = vcombine.low %v3851_v39, %v3855_v40  ;;  %v4499_v51 = vrot.slane %v4489_v41, %v5660_v31  ;;  %v2322_v53 = vrot.slane %v6040_v19, %v5636_v22  ;;  %v2326_v54 = vrot.slane %v6040_v19, %v5639_v23 }
 0x18d   : > { %v2999_v38 = vrot.slane %v2985_v42, %v5660_v31  ;;  %v4506_v56 = vrot.slane %v4490_v11, %v5660_v31  ;;  %v4513_v59 = vrot.slane %v4491_v44, %v5660_v31  ;;  %v2330_v60 = vrot.slane %v6040_v19, %v5642_v24 }
 0x18e   : > { %v4520_v50 = vrot.slane %v4492_v47, %v5660_v31  ;;  %v2334_v62 = vrot.slane %v6040_v19, %v5645_v25  ;;  %v2338_v0 = vrot.slane %v6040_v19, %v5648_v26  ;;  %v2342_v1 = vrot.slane %v6040_v19, %v5651_v27 }
 0x18f   : > { %v3000_v2 = vcombine.low %v2992_v43, %v2999_v38  ;;  %v4521_v3 = vcombine.low %v4499_v51, %v4506_v56  ;;  %v2346_v45 = vrot.slane %v6040_v19, %v5654_v28  ;;  %v2350_v4 = vrot.slane %v6040_v19, %v5657_v29 }
 0x190   : > { %v4522_v5 = vcombine.low %v4513_v59, %v4520_v50  ;;  %v3001_v7 = vcombine.low %v2322_v53, %v2326_v54  ;;  %v3002_v49 = vcombine.low %v2330_v60, %v2334_v62  ;;  %v3003_v8 = vcombine.low %v2338_v0, %v2342_v1  ;;  %v6366_v60 = vpop.permute.xlu1 %1739 }
 0x191   : > { %3323 = vperm.xlu1 %5226, %v3000_v2   ;;  %v4529_v9 = vrot.slane %v4521_v3, %v5660_v31  ;;  %v3004_v10 = vcombine.low %v2346_v45, %v2350_v4  ;;  %v3859_v15 = vrot.slane %v3504_v61, %v5636_v22  ;;  %v3863_v18 = vrot.slane %v3504_v61, %v5639_v23 }
 0x192   : > { %v4536_v21 = vrot.slane %v4522_v5, %v5660_v31  ;;  %v3011_v52 = vrot.slane %v3001_v7, %v5660_v31  ;;  %v3018_v19 = vrot.slane %v3002_v49, %v5660_v31  ;;  %v3025_v37 = vrot.slane %v3003_v8, %v5660_v31 }
 0x193   : > { %v3032_v16 = vrot.slane %v3004_v10, %v5660_v31  ;;  %v3867_v12 = vrot.slane %v3504_v61, %v5642_v24  ;;  %v3871_v34 = vrot.slane %v3504_v61, %v5645_v25  ;;  %v3875_v35 = vrot.slane %v3504_v61, %v5648_v26 }
 0x194   : > { %v4537_v36 = vcombine.low %v4529_v9, %v4536_v21  ;;  %v3033_v63 = vcombine.low %v3011_v52, %v3018_v19  ;;  %v3879_v39 = vrot.slane %v3504_v61, %v5651_v27  ;;  %v3883_v40 = vrot.slane %v3504_v61, %v5654_v28 }
 0x195   : > { %v3034_v41 = vcombine.low %v3025_v37, %v3032_v16  ;;  %v3887_v42 = vrot.slane %v3504_v61, %v5657_v29  ;;  %v4538_v43 = vcombine.low %v3859_v15, %v3863_v18  ;;  %v4539_v11 = vcombine.low %v3867_v12, %v3871_v34  ;;  %v6395_v34 = vpop.permute.xlu1 %1742 }
 0x196   : > { %4860 = vperm.xlu0 %5225, %v4537_v36   ;;  %v3041_v44 = vrot.slane %v3033_v63, %v5660_v31  ;;  %v4540_v47 = vcombine.low %v3875_v35, %v3879_v39  ;;  %v2354_v51 = vrot.slane %v6017_v58, %v5636_v22  ;;  %v2358_v53 = vrot.slane %v6017_v58, %v5639_v23 }
 0x197   : > { %v3048_v54 = vrot.slane %v3034_v41, %v5660_v31  ;;  %v4541_v38 = vcombine.low %v3883_v40, %v3887_v42  ;;  %v4548_v56 = vrot.slane %v4538_v43, %v5660_v31  ;;  %v4555_v59 = vrot.slane %v4539_v11, %v5660_v31 }
 0x198   : > { %v4562_v61 = vrot.slane %v4540_v47, %v5660_v31  ;;  %v2362_v50 = vrot.slane %v6017_v58, %v5642_v24  ;;  %v2366_v62 = vrot.slane %v6017_v58, %v5645_v25  ;;  %v2370_v0 = vrot.slane %v6017_v58, %v5648_v26 }
 0x199   : > { %v3049_v1 = vcombine.low %v3041_v44, %v3048_v54  ;;  %v4569_v2 = vrot.slane %v4541_v38, %v5660_v31  ;;  %v4570_v3 = vcombine.low %v4548_v56, %v4555_v59  ;;  %v2374_v45 = vrot.slane %v6017_v58, %v5651_v27 }
 0x19a   : > { %v2378_v4 = vrot.slane %v6017_v58, %v5654_v28  ;;  %v2382_v5 = vrot.slane %v6017_v58, %v5657_v29  ;;  %v3050_v7 = vcombine.low %v2354_v51, %v2358_v53  ;;  %v3051_v49 = vcombine.low %v2362_v50, %v2366_v62  ;;  %v3510_v62 = vpop.xlane.xlu0 %3509 }
 0x19b   : > { %3326 = vperm.xlu1 %5226, %v3049_v1   ;;  %v4571_v8 = vcombine.low %v4562_v61, %v4569_v2  ;;  %v4578_v9 = vrot.slane %v4570_v3, %v5660_v31  ;;  %v3052_v10 = vcombine.low %v2370_v0, %v2374_v45  ;;  %v3891_v15 = vrot.slane %v6242_v14, %v5636_v22  ;;  %v6424_v45 = vpop.permute.xlu1 %1745 }
 0x19c   : > { %v3053_v18 = vcombine.low %v2378_v4, %v2382_v5  ;;  %v3060_v21 = vrot.slane %v3050_v7, %v5660_v31  ;;  %v3067_v52 = vrot.slane %v3051_v49, %v5660_v31  ;;  %v3895_v19 = vrot.slane %v6242_v14, %v5639_v23 }
 0x19d   : > { %v4585_v58 = vrot.slane %v4571_v8, %v5660_v31  ;;  %v3074_v37 = vrot.slane %v3052_v10, %v5660_v31  ;;  %v3899_v16 = vrot.slane %v6242_v14, %v5642_v24  ;;  %v3903_v12 = vrot.slane %v6242_v14, %v5645_v25 }
 0x19e   : > { %v3081_v35 = vrot.slane %v3053_v18, %v5660_v31  ;;  %v3082_v36 = vcombine.low %v3060_v21, %v3067_v52  ;;  %v3907_v63 = vrot.slane %v6242_v14, %v5648_v26  ;;  %v3911_v39 = vrot.slane %v6242_v14, %v5651_v27 }
 0x19f   : > { %v4586_v40 = vcombine.low %v4578_v9, %v4585_v58  ;;  %v3915_v41 = vrot.slane %v6242_v14, %v5654_v28  ;;  %v3919_v42 = vrot.slane %v6242_v14, %v5657_v29  ;;  %v4587_v43 = vcombine.low %v3891_v15, %v3895_v19 }
 0x1a0   : > { %v3083_v11 = vcombine.low %v3074_v37, %v3081_v35  ;;  %v3090_v44 = vrot.slane %v3082_v36, %v5660_v31  ;;  %v4588_v47 = vcombine.low %v3899_v16, %v3903_v12  ;;  %v4589_v51 = vcombine.low %v3907_v63, %v3911_v39  ;;  %v6437_v12 = vpop.xlane.xlu0 %3515 }
 0x1a1   : > { %4863 = vperm.xlu0 %5225, %v4586_v40   ;;  %v4590_v53 = vcombine.low %v3915_v41, %v3919_v42  ;;  %v4597_v54 = vrot.slane %v4587_v43, %v5660_v31  ;;  %v2386_v38 = vrot.slane %v6071_v57, %v5636_v22  ;;  %v2390_v56 = vrot.slane %v6071_v57, %v5639_v23 }
 0x1a2   : > { %v3097_v59 = vrot.slane %v3083_v11, %v5660_v31  ;;  %v4604_v14 = vrot.slane %v4588_v47, %v5660_v31  ;;  %v4611_v61 = vrot.slane %v4589_v51, %v5660_v31  ;;  %v2394_v50 = vrot.slane %v6071_v57, %v5642_v24  ;;  %v6445_v11 = vpop.permute.xlu1 %1748 }
 0x1a3   : > { %v4618_v0 = vrot.slane %v4590_v53, %v5660_v31  ;;  %v2398_v1 = vrot.slane %v6071_v57, %v5645_v25  ;;  %v2402_v2 = vrot.slane %v6071_v57, %v5648_v26  ;;  %v2406_v3 = vrot.slane %v6071_v57, %v5651_v27 }
 0x1a4   : > { %v3098_v4 = vcombine.low %v3090_v44, %v3097_v59  ;;  %v4619_v5 = vcombine.low %v4597_v54, %v4604_v14  ;;  %v2410_v7 = vrot.slane %v6071_v57, %v5654_v28  ;;  %v2414_v49 = vrot.slane %v6071_v57, %v5657_v29 }
 0x1a5   : > { %v4620_v8 = vcombine.low %v4611_v61, %v4618_v0  ;;  %v3099_v9 = vcombine.low %v2386_v38, %v2390_v56  ;;  %v3100_v10 = vcombine.low %v2394_v50, %v2398_v1  ;;  %v3101_v15 = vcombine.low %v2402_v2, %v2406_v3 }
 0x1a6   : > { %3329 = vperm.xlu1 %5226, %v3098_v4   ;;  %v4627_v18 = vrot.slane %v4619_v5, %v5660_v31  ;;  %v3102_v21 = vcombine.low %v2410_v7, %v2414_v49  ;;  %v3923_v52 = vrot.slane %v3510_v62, %v5636_v22  ;;  %v3927_v19 = vrot.slane %v3510_v62, %v5639_v23 }
 0x1a7   : > { %v4634_v58 = vrot.slane %v4620_v8, %v5660_v31  ;;  %v3109_v37 = vrot.slane %v3099_v9, %v5660_v31  ;;  %v3116_v16 = vrot.slane %v3100_v10, %v5660_v31  ;;  %v3123_v57 = vrot.slane %v3101_v15, %v5660_v31 }
 0x1a8   : > { %v3130_v35 = vrot.slane %v3102_v21, %v5660_v31  ;;  %v3931_v36 = vrot.slane %v3510_v62, %v5642_v24  ;;  %v3935_v63 = vrot.slane %v3510_v62, %v5645_v25  ;;  %v3939_v39 = vrot.slane %v3510_v62, %v5648_v26  ;;  %v6472_v21 = vpop.permute.xlu1 %1751 }
 0x1a9   : > { %v4635_v40 = vcombine.low %v4627_v18, %v4634_v58  ;;  %v3131_v41 = vcombine.low %v3109_v37, %v3116_v16  ;;  %v3943_v42 = vrot.slane %v3510_v62, %v5651_v27  ;;  %v3947_v43 = vrot.slane %v3510_v62, %v5654_v28 }
 0x1aa   : > { %v3132_v44 = vcombine.low %v3123_v57, %v3130_v35  ;;  %v3951_v47 = vrot.slane %v3510_v62, %v5657_v29  ;;  %v4636_v51 = vcombine.low %v3923_v52, %v3927_v19  ;;  %v4637_v53 = vcombine.low %v3931_v36, %v3935_v63  ;;  %v6456_v62 = vpop.permute.xlu0 %1727 }
 0x1ab   : > { %4866 = vperm.xlu0 %5225, %v4635_v40   ;;  %v3139_v54 = vrot.slane %v3131_v41, %v5660_v31  ;;  %v4638_v38 = vcombine.low %v3939_v39, %v3943_v42  ;;  %v2418_v56 = vrot.slane %v6047_v33, %v5636_v22  ;;  %v2422_v59 = vrot.slane %v6047_v33, %v5639_v23 }
 0x1ac   : > { %v3146_v14 = vrot.slane %v3132_v44, %v5660_v31  ;;  %v4639_v61 = vcombine.low %v3947_v43, %v3951_v47  ;;  %v4646_v50 = vrot.slane %v4636_v51, %v5660_v31  ;;  %v4653_v0 = vrot.slane %v4637_v53, %v5660_v31 }
 0x1ad   : > { %v4660_v1 = vrot.slane %v4638_v38, %v5660_v31  ;;  %v2426_v2 = vrot.slane %v6047_v33, %v5642_v24  ;;  %v2430_v3 = vrot.slane %v6047_v33, %v5645_v25  ;;  %v2434_v4 = vrot.slane %v6047_v33, %v5648_v26 }
 0x1ae   : > { %v3147_v5 = vcombine.low %v3139_v54, %v3146_v14  ;;  %v4667_v7 = vrot.slane %v4639_v61, %v5660_v31  ;;  %v4668_v49 = vcombine.low %v4646_v50, %v4653_v0  ;;  %v2438_v8 = vrot.slane %v6047_v33, %v5651_v27  ;;  %v6477_v16 = vpop.permute.xlu0 %1754  ;;  %v6499_v50 = vpop.permute.xlu1 %1757 }
 0x1af   : > { %v2442_v9 = vrot.slane %v6047_v33, %v5654_v28  ;;  %v2446_v10 = vrot.slane %v6047_v33, %v5657_v29  ;;  %v3148_v15 = vcombine.low %v2418_v56, %v2422_v59  ;;  %v3149_v18 = vcombine.low %v2426_v2, %v2430_v3 }
 0x1b0   : > { %3332 = vperm.xlu1 %5226, %v3147_v5   ;;  %v4669_v52 = vcombine.low %v4660_v1, %v4667_v7  ;;  %v4676_v19 = vrot.slane %v4668_v49, %v5660_v31  ;;  %v3150_v58 = vcombine.low %v2434_v4, %v2438_v8  ;;  %v3955_v37 = vrot.slane %v6261_v32, %v5636_v22 }
 0x1b1   : > { %v3151_v57 = vcombine.low %v2442_v9, %v2446_v10  ;;  %v3158_v35 = vrot.slane %v3148_v15, %v5660_v31  ;;  %v3165_v36 = vrot.slane %v3149_v18, %v5660_v31  ;;  %v3959_v33 = vrot.slane %v6261_v32, %v5639_v23 }
 0x1b2   : > { %v4683_v63 = vrot.slane %v4669_v52, %v5660_v31  ;;  %v3172_v39 = vrot.slane %v3150_v58, %v5660_v31  ;;  %v3963_v40 = vrot.slane %v6261_v32, %v5642_v24  ;;  %v3967_v41 = vrot.slane %v6261_v32, %v5645_v25  ;;  %v6506_v4 = vpop.permute.xlu0 %1760 }
 0x1b3   : > { %v3179_v42 = vrot.slane %v3151_v57, %v5660_v31  ;;  %v3180_v43 = vcombine.low %v3158_v35, %v3165_v36  ;;  %v3971_v44 = vrot.slane %v6261_v32, %v5648_v26  ;;  %v3975_v47 = vrot.slane %v6261_v32, %v5651_v27 }
 0x1b4   : > { %v4684_v51 = vcombine.low %v4676_v19, %v4683_v63  ;;  %v3979_v53 = vrot.slane %v6261_v32, %v5654_v28  ;;  %v3983_v54 = vrot.slane %v6261_v32, %v5657_v29  ;;  %v4685_v38 = vcombine.low %v3955_v37, %v3959_v33 }
 0x1b5   : > { %v3181_v56 = vcombine.low %v3172_v39, %v3179_v42  ;;  %v3188_v59 = vrot.slane %v3180_v43, %v5660_v31  ;;  %v4686_v14 = vcombine.low %v3963_v40, %v3967_v41  ;;  %v4687_v61 = vcombine.low %v3971_v44, %v3975_v47  ;;  %v6529_v41 = vpop.permute.xlu1 %1763 }
 0x1b6   : > { %4869 = vperm.xlu0 %5225, %v4684_v51   ;;  %v4688_v0 = vcombine.low %v3979_v53, %v3983_v54  ;;  %v4695_v1 = vrot.slane %v4685_v38, %v5660_v31  ;;  %v2450_v2 = vrot.slane %v6099_v13, %v5636_v22  ;;  %v2454_v3 = vrot.slane %v6099_v13, %v5639_v23  ;;  %v6535_v47 = vpop.permute.xlu0 %1766 }
 0x1b7   : > { %v3195_v32 = vrot.slane %v3181_v56, %v5660_v31  ;;  %v4702_v5 = vrot.slane %v4686_v14, %v5660_v31  ;;  %v4709_v7 = vrot.slane %v4687_v61, %v5660_v31  ;;  %v2458_v49 = vrot.slane %v6099_v13, %v5642_v24 }
 0x1b8   : > { %v4716_v8 = vrot.slane %v4688_v0, %v5660_v31  ;;  %v2462_v9 = vrot.slane %v6099_v13, %v5645_v25  ;;  %v2466_v10 = vrot.slane %v6099_v13, %v5648_v26  ;;  %v2470_v15 = vrot.slane %v6099_v13, %v5651_v27 }
 0x1b9   : > { %v3196_v18 = vcombine.low %v3188_v59, %v3195_v32  ;;  %v4717_v52 = vcombine.low %v4695_v1, %v4702_v5  ;;  %v2474_v19 = vrot.slane %v6099_v13, %v5654_v28  ;;  %v2478_v58 = vrot.slane %v6099_v13, %v5657_v29 }
 0x1ba   : > { %v4718_v37 = vcombine.low %v4709_v7, %v4716_v8  ;;  %v3197_v57 = vcombine.low %v2450_v2, %v2454_v3  ;;  %v3198_v35 = vcombine.low %v2458_v49, %v2462_v9  ;;  %v3199_v36 = vcombine.low %v2466_v10, %v2470_v15 }
 0x1bb   : > { %3335 = vperm.xlu1 %5226, %v3196_v18   ;;  %v4725_v33 = vrot.slane %v4717_v52, %v5660_v31  ;;  %v3200_v63 = vcombine.low %v2474_v19, %v2478_v58  ;;  %v3987_v39 = vrot.slane %v6437_v12, %v5636_v22  ;;  %v3991_v40 = vrot.slane %v6437_v12, %v5639_v23 }
 0x1bc   : > { %v4732_v42 = vrot.slane %v4718_v37, %v5660_v31  ;;  %v3207_v13 = vrot.slane %v3197_v57, %v5660_v31  ;;  %v3214_v43 = vrot.slane %v3198_v35, %v5660_v31  ;;  %v3221_v44 = vrot.slane %v3199_v36, %v5660_v31  ;;  %v6567_v37 = vpop.permute.xlu0 %1772 }
 0x1bd   : > { %v3228_v51 = vrot.slane %v3200_v63, %v5660_v31  ;;  %v3995_v53 = vrot.slane %v6437_v12, %v5642_v24  ;;  %v3999_v54 = vrot.slane %v6437_v12, %v5645_v25  ;;  %v4003_v38 = vrot.slane %v6437_v12, %v5648_v26 }
 0x1be   : > { %v4733_v56 = vcombine.low %v4725_v33, %v4732_v42  ;;  %v3229_v59 = vcombine.low %v3207_v13, %v3214_v43  ;;  %v4007_v14 = vrot.slane %v6437_v12, %v5651_v27  ;;  %v4011_v61 = vrot.slane %v6437_v12, %v5654_v28 }
 0x1bf   : > { %v3230_v0 = vcombine.low %v3221_v44, %v3228_v51  ;;  %v4015_v1 = vrot.slane %v6437_v12, %v5657_v29  ;;  %v4734_v2 = vcombine.low %v3987_v39, %v3991_v40  ;;  %v4735_v3 = vcombine.low %v3995_v53, %v3999_v54  ;;  %v6558_v12 = vpop.permute.xlu1 %1769 }
 0x1c0   : > { %4872 = vperm.xlu0 %5225, %v4733_v56   ;;  %v3237_v32 = vrot.slane %v3229_v59, %v5660_v31  ;;  %v4736_v5 = vcombine.low %v4003_v38, %v4007_v14  ;;  %v2482_v7 = vrot.slane %v6076_v55, %v5636_v22  ;;  %v2486_v49 = vrot.slane %v6076_v55, %v5639_v23 }
 0x1c1   : > { %v3244_v8 = vrot.slane %v3230_v0, %v5660_v31  ;;  %v4737_v9 = vcombine.low %v4011_v61, %v4015_v1  ;;  %v4744_v10 = vrot.slane %v4734_v2, %v5660_v31  ;;  %v4751_v15 = vrot.slane %v4735_v3, %v5660_v31  ;;  %v6596_v3 = vpop.permute.xlu0 %3296 }
 0x1c2   : > { %v4758_v18 = vrot.slane %v4736_v5, %v5660_v31  ;;  %v2490_v52 = vrot.slane %v6076_v55, %v5642_v24  ;;  %v2494_v19 = vrot.slane %v6076_v55, %v5645_v25  ;;  %v2498_v58 = vrot.slane %v6076_v55, %v5648_v26 }
 0x1c3   : > { %v3245_v57 = vcombine.low %v3237_v32, %v3244_v8  ;;  %v4765_v35 = vrot.slane %v4737_v9, %v5660_v31  ;;  %v4766_v36 = vcombine.low %v4744_v10, %v4751_v15  ;;  %v2502_v33 = vrot.slane %v6076_v55, %v5651_v27  ;;  %v6589_v0 = vpop.permute.xlu1 %3299 }
 0x1c4   : > { %v2506_v63 = vrot.slane %v6076_v55, %v5654_v28  ;;  %v2510_v39 = vrot.slane %v6076_v55, %v5657_v29  ;;  %v3246_v40 = vcombine.low %v2482_v7, %v2486_v49  ;;  %v3247_v42 = vcombine.low %v2490_v52, %v2494_v19 }
 0x1c5   : > { %3338 = vperm.xlu1 %5226, %v3245_v57   ;;  %v4767_v13 = vcombine.low %v4758_v18, %v4765_v35  ;;  %v4774_v43 = vrot.slane %v4766_v36, %v5660_v31  ;;  %v3248_v44 = vcombine.low %v2498_v58, %v2502_v33  ;;  %v4019_v51 = vrot.slane %v6275_v48, %v5636_v22  ;;  %v6620_v36 = vpop.permute.xlu0 %3305 }
 0x1c6   : > { %v3249_v53 = vcombine.low %v2506_v63, %v2510_v39  ;;  %v3256_v54 = vrot.slane %v3246_v40, %v5660_v31  ;;  %v3263_v38 = vrot.slane %v3247_v42, %v5660_v31  ;;  %v4023_v56 = vrot.slane %v6275_v48, %v5639_v23 }
 0x1c7   : > { %v4781_v55 = vrot.slane %v4767_v13, %v5660_v31  ;;  %v3270_v59 = vrot.slane %v3248_v44, %v5660_v31  ;;  %v4027_v14 = vrot.slane %v6275_v48, %v5642_v24  ;;  %v4031_v61 = vrot.slane %v6275_v48, %v5645_v25 }
 0x1c8   : > { %v3277_v22 = vrot.slane %v3249_v53, %v5660_v31  ;;  %v3278_v1 = vcombine.low %v3256_v54, %v3263_v38  ;;  %v4035_v2 = vrot.slane %v6275_v48, %v5648_v26  ;;  %v4039_v23 = vrot.slane %v6275_v48, %v5651_v27  ;;  %v6617_v58 = vpop.permute.xlu1 %3302 }
 0x1c9   : > { %v4782_v32 = vcombine.low %v4774_v43, %v4781_v55  ;;  %v4043_v24 = vrot.slane %v6275_v48, %v5654_v28  ;;  %v4047_v25 = vrot.slane %v6275_v48, %v5657_v29  ;;  %v4783_v5 = vcombine.low %v4019_v51, %v4023_v56 }
 0x1ca   : > { %v3279_v7 = vcombine.low %v3270_v59, %v3277_v22  ;;  %v3286_v49 = vrot.slane %v3278_v1, %v5660_v31  ;;  %v4784_v8 = vcombine.low %v4027_v14, %v4031_v61  ;;  %v4785_v9 = vcombine.low %v4035_v2, %v4039_v23  ;;  %v6661_v2 = vpop.permute.xlu0 %3308 }
 0x1cb   : > { %4875 = vperm.xlu0 %5225, %v4782_v32   ;;  %v4786_v26 = vcombine.low %v4043_v24, %v4047_v25  ;;  %v4793_v10 = vrot.slane %v4783_v5, %v5660_v31  ;;  %v6605_v27 = vand.u32 127, %v430_v17 }
 0x1cc   : > { %v3293_v15 = vrot.slane %v3279_v7, %v5660_v31  ;;  %v4800_v28 = vrot.slane %v4784_v8, %v5660_v31  ;;  %v4807_v18 = vrot.slane %v4785_v9, %v5660_v31 }
 0x1cd   : > { %v4814_v29 = vrot.slane %v4786_v26, %v5660_v31  ;;  %v6613_v48 = vsub.s32 %v6605_v27, %v5633_v20  ;;  %v1780_v52 = vadd.s32 4294967288, %v6605_v27  ;;  %v1787_v19 = vadd.s32 4294967280, %v6605_v27 }
 0x1ce   : > { %v3294_v17 = vcombine.low %v3286_v49, %v3293_v15  ;;  %v4815_v57 = vcombine.low %v4793_v10, %v4800_v28  ;;  %v1794_v35 = vadd.s32 4294967272, %v6605_v27  ;;  %v1801_v43 = vadd.s32 4294967264, %v6605_v27 }
 0x1cf   : > { %v4816_v33 = vcombine.low %v4807_v18, %v4814_v29  ;;  %v6623_v63 = vsub.s32 %v1780_v52, %v5633_v20  ;;  %v6626_v39 = vsub.s32 %v1787_v19, %v5633_v20  ;;  %v1779_v42 = vrot.slane %v6456_v62, %v6613_v48  ;;  %v3318_v52 = vpop.permute.xlu0 %3317 }
 0x1d0   : > { %3341 = vperm.xlu1 %5226, %v3294_v17   ;;  %v4823_v40 = vrot.slane %v4815_v57, %v5660_v31  ;;  %v6632_v13 = vsub.s32 %v1794_v35, %v5633_v20  ;;  %v1836_v54 = vadd.s32 4294967224, %v6605_v27  ;;  %v6644_v62 = vsub.s32 %v1801_v43, %v5633_v20 }
 0x1d1   : > { %v4830_v44 = vrot.slane %v4816_v33, %v5660_v31  ;;  %v1784_v51 = vrot.slane %v6294_v6, %v6623_v63  ;;  %v1791_v53 = vrot.slane %v6319_v46, %v6626_v39  ;;  %v1808_v56 = vadd.s32 4294967256, %v6605_v27  ;;  %v6652_v46 = vpop.permute.xlu1 %3311 }
 0x1d2   : > { %v1798_v38 = vrot.slane %v6345_v30, %v6632_v13  ;;  %v6649_v14 = vsub.s32 %v1836_v54, %v5633_v20  ;;  %v1850_v6 = vadd.s32 4294967208, %v6605_v27  ;;  %v1805_v30 = vrot.slane %v6366_v60, %v6644_v62 }
 0x1d3   : > { %v4831_v55 = vcombine.low %v4823_v40, %v4830_v44  ;;  %v1786_v59 = vsel %vm1785_vm0, %v1784_v51, %v1779_v42  ;;  %v6658_v22 = vsub.s32 %v1808_v56, %v5633_v20  ;;  %v1815_v1 = vadd.s32 4294967248, %v6605_v27 }
 0x1d4   : > { %v1793_v61 = vsel %vm1792_vm1, %v1791_v53, %v1786_v59  ;;  %v6665_v32 = vsub.s32 %v1850_v6, %v5633_v20  ;;  %v1840_v24 = vrot.slane %v6477_v16, %v6649_v14  ;;  %v1864_v5 = vadd.s32 4294967192, %v6605_v27 }
 0x1d5   : > { %4878 = vperm.xlu0 %5225, %v4831_v55   ;;  %v1800_v23 = vsel %vm1799_vm2, %v1798_v38, %v1793_v61  ;;  %v1812_v60 = vrot.slane %v6395_v34, %v6658_v22  ;;  %v6672_v25 = vsub.s32 %v1815_v1, %v5633_v20  ;;  %v1822_v49 = vadd.s32 4294967240, %v6605_v27  ;;  %v3315_v18 = vpop.permute.xlu1 %3314 }
 0x1d6   : > { %v1807_v7 = vsel %vm1806_vm3, %v1805_v30, %v1800_v23  ;;  %v1878_v8 = vadd.s32 4294967176, %v6605_v27  ;;  %v1854_v9 = vrot.slane %v6506_v4, %v6665_v32  ;;  %v6683_v34 = vsub.s32 %v1864_v5, %v5633_v20 }
 0x1d7   : > { %v1819_v16 = vrot.slane %v6424_v45, %v6672_v25  ;;  %v1829_v26 = vadd.s32 4294967232, %v6605_v27  ;;  %v1814_v10 = vsel %vm1813_vm4, %v1812_v60, %v1807_v7  ;;  %v6688_v15 = vsub.s32 %v1822_v49, %v5633_v20 }
 0x1d8   : > { %v6691_v28 = vsub.s32 %v1878_v8, %v5633_v20  ;;  %v3346_v45 = vrot.slane %v6596_v3, %v6613_v48  ;;  %v1868_v19 = vrot.slane %v6535_v47, %v6683_v34  ;;  %v1843_v57 = vadd.s32 4294967216, %v6605_v27 }
 0x1d9   : > { %v1821_v4 = vsel %vm1820_vm5, %v1819_v16, %v1814_v10  ;;  %v6695_v29 = vsub.s32 %v1829_v26, %v5633_v20  ;;  %v1826_v17 = vrot.slane %v6445_v11, %v6688_v15  ;;  %v3360_v33 = vrot.slane %v6620_v36, %v6632_v13  ;;  %v4834_v54 = vpop.permute.xlu1 %4833 }
 0x1da   : > { %v1857_v40 = vadd.s32 4294967200, %v6605_v27  ;;  %v6711_v42 = vsub.s32 %v1843_v57, %v5633_v20  ;;  %v1871_v51 = vadd.s32 4294967184, %v6605_v27  ;;  %v5374_v53 = vmov 0.0  }
 0x1db   : > { %v1833_v35 = vrot.slane %v6472_v21, %v6695_v29  ;;  %v1828_v3 = vsel %vm1827_vm6, %v1826_v17, %v1821_v4  ;;  %v3365_v21 = vrot.slane %v6661_v2, %v6644_v62  ;;  %330 = vst [vmem:[#allocation2] sm:$0x1] %v5374_v53  ;;  %331 = vst [vmem:[#allocation3] sm:$0x1] %v5374_v53 }
 0x1dc   : > { %v6715_v47 = vsub.s32 %v1857_v40, %v5633_v20  ;;  %v1847_v44 = vrot.slane %v6499_v50, %v6711_v42  ;;  %332 = vst [vmem:[#allocation4] sm:$0x1] %v5374_v53  ;;  %v3350_v56 = vrot.slane %v6589_v0, %v6623_v63  ;;  %v6729_v50 = vsub.s32 %v1871_v51, %v5633_v20 }
 0x1dd   : > { %v1835_v11 = vsel %vm1834_vm7, %v1833_v35, %v1828_v3  ;;  %v4837_v43 = vpop.permute.xlu0 %4836  ;;  %v3355_v27 = vrot.slane %v6617_v58, %v6626_v39  ;;  %v3370_v59 = vrot.slane %v6652_v46, %v6658_v22  ;;  %v3375_v61 = vrot.slane %v3315_v18, %v6672_v25 }
 0x1de   : > { %v1842_v36 = vsel %vm1841_vm8, %v1840_v24, %v1835_v11  ;;  %v1861_v38 = vrot.slane %v6529_v41, %v6715_v47  ;;  %v3351_v41 = vsel %vm1785_vm0, %v3350_v56, %v3346_v45  ;;  %v4883_v30 = vrot.slane %v4834_v54, %v6613_v48 }
 0x1df   : > { %v1849_v55 = vsel %vm1848_vm9, %v1847_v44, %v1842_v36  ;;  %v1875_v20 = vrot.slane %v6558_v12, %v6729_v50  ;;  %v3356_v1 = vsel %vm1792_vm1, %v3355_v27, %v3351_v41  ;;  %v4887_v58 = vrot.slane %v4837_v43, %v6623_v63 }
 0x1e0   : > { %v1856_v6 = vsel %vm1855_vm10, %v1854_v9, %v1849_v55  ;;  %v1882_v46 = vrot.slane %v6567_v37, %v6691_v28  ;;  %v3361_v23 = vsel %vm1799_vm2, %v3360_v33, %v3356_v1  ;;  %v3380_v63 = vrot.slane %v3318_v52, %v6688_v15 }
 0x1e1   : > { %v1863_v0 = vsel %vm1862_vm11, %v1861_v38, %v1856_v6  ;;  %v3366_v60 = vsel %vm1806_vm3, %v3365_v21, %v3361_v23  ;;  %v4888_v5 = vsel %vm1785_vm0, %v4887_v58, %v4883_v30 }
 0x1e2   : > { %v1870_v2 = vsel %vm1869_vm12, %v1868_v19, %v1863_v0  ;;  %v4843_v24 = vpop.permute.xlu0 %4842  ;;  %v3371_v7 = vsel %vm1813_vm4, %v3370_v59, %v3366_v60  ;;  %v365_v16 = vld [vmem:[#allocation2] sm:$0x1] }
 0x1e3   : > { %v1877_v48 = vsel %vm1876_vm13, %v1875_v20, %v1870_v2  ;;  %v3376_v49 = vsel %vm1820_vm5, %v3375_v61, %v3371_v7  ;;  %v4897_v9 = vrot.slane %v4843_v24, %v6632_v13 }
 0x1e4   : > { %v1884_v12 = vsel %vm1883_vm14, %v1882_v46, %v1877_v48  ;;  %v3381_v10 = vsel %vm1827_vm6, %v3380_v63, %v3376_v49 }
 0x1e5   : > { %v1891_v37 = vrot.slane %v1884_v12, %v5660_v31 }
 0x1e7   : > { %v4840_v8 = vpop.permute.xlu1 %4839  ;;  %v1898_v18 = vrot.slane %v1891_v37, %v5660_v31 }
 0x1e8   : > { %v4892_v26 = vrot.slane %v4840_v8, %v6626_v39 }
 0x1e9   : > { %v1900_v45 = vadd.f32 %v1898_v18, %v365_v16 }
 0x1ea   : > { %v4893_v4 = vsel %vm1792_vm1, %v4892_v26, %v4888_v5 }
 0x1eb   : > { %v4898_v52 = vsel %vm1799_vm2, %v4897_v9, %v4893_v4  ;;  %1901 = vst [vmem:[#allocation2] sm:$0x1] %v1900_v45 }
 0x1ec   : > { %v4849_v19 = vpop.permute.xlu0 %4848 }
 0x1ed   : > { %v4907_v13 = vrot.slane %v4849_v19, %v6658_v22 }
 0x1f2   : > { %v4846_v17 = vpop.permute.xlu1 %4845  ;;  %v4979_v39 = vld [vmem:[#allocation2] sm:$0x1] }
 0x1f3   : > { %v4902_v57 = vrot.slane %v4846_v17, %v6644_v62  ;;  %v4980_v35 = vmul.f32 0.00390625, %v4979_v39 }
 0x1f5   : > { %v4903_v33 = vsel %vm1806_vm3, %v4902_v57, %v4898_v52  ;;  %4981 = vst [vmem:[%s6769_s24] sm:$0x1] %v4980_v35  ;;  %v1934_v52 = vld [vmem:[#allocation3] sm:$0x1]  ;;  %v3471_v35 = vld [vmem:[#allocation4] sm:$0x1] }
 0x1f6   : > { %v4908_v40 = vsel %vm1813_vm4, %v4907_v13, %v4903_v33 }
 0x1f7   : > { %v4855_v3 = vpop.permute.xlu0 %4854 }
 0x1f8   : > { %v4917_v21 = vrot.slane %v4855_v3, %v6688_v15 }
 0x1fc   : > { %v4852_v11 = vpop.permute.xlu1 %4851 }
 0x1fd   : > { %v4912_v22 = vrot.slane %v4852_v11, %v6672_v25 }
 0x1ff   : > { %v4913_v62 = vsel %vm1820_vm5, %v4912_v22, %v4908_v40 }
 0x200   : > { %v4918_v43 = vsel %vm1827_vm6, %v4917_v21, %v4913_v62 }
 0x201   : > { %v3321_v36 = vpop.permute.xlu1 %3320 }
 0x202   : > { %v3385_v44 = vrot.slane %v3321_v36, %v6695_v29 }
 0x204   : > { %v3386_v51 = vsel %vm1834_vm7, %v3385_v44, %v3381_v10 }
 0x207   : > { %v4858_v53 = vpop.permute.xlu0 %4857 }
 0x208   : > { %v4922_v54 = vrot.slane %v4858_v53, %v6695_v29 }
 0x20a   : > { %v4923_v38 = vsel %vm1834_vm7, %v4922_v54, %v4918_v43 }
 0x20c   : > { %v3324_v56 = vpop.permute.xlu1 %3323 }
 0x20d   : > { %v3390_v55 = vrot.slane %v3324_v56, %v6649_v14 }
 0x20f   : > { %v3391_v15 = vsel %vm1841_vm8, %v3390_v55, %v3386_v51 }
 0x211   : > { %v4861_v25 = vpop.permute.xlu0 %4860 }
 0x212   : > { %v4927_v27 = vrot.slane %v4861_v25, %v6649_v14 }
 0x214   : > { %v4928_v59 = vsel %vm1841_vm8, %v4927_v27, %v4923_v38 }
 0x216   : > { %v3327_v6 = vpop.permute.xlu1 %3326 }
 0x217   : > { %v3395_v41 = vrot.slane %v3327_v6, %v6711_v42 }
 0x219   : > { %v3396_v61 = vsel %vm1848_vm9, %v3395_v41, %v3391_v15 }
 0x21c   : > { %v4864_v30 = vpop.permute.xlu0 %4863 }
 0x21d   : > { %v4932_v29 = vrot.slane %v4864_v30, %v6711_v42 }
 0x21f   : > { %v4933_v0 = vsel %vm1848_vm9, %v4932_v29, %v4928_v59 }
 0x221   : > { %v3330_v20 = vpop.permute.xlu1 %3329 }
 0x222   : > { %v3400_v14 = vrot.slane %v3330_v20, %v6665_v32 }
 0x224   : > { %v3401_v12 = vsel %vm1855_vm10, %v3400_v14, %v3396_v61 }
 0x226   : > { %v4867_v1 = vpop.permute.xlu0 %4866 }
 0x227   : > { %v4937_v63 = vrot.slane %v4867_v1, %v6665_v32 }
 0x229   : > { %v4938_v4 = vsel %vm1855_vm10, %v4937_v63, %v4933_v0 }
 0x22b   : > { %v3333_v58 = vpop.permute.xlu1 %3332 }
 0x22c   : > { %v3405_v48 = vrot.slane %v3333_v58, %v6715_v47 }
 0x22e   : > { %v3406_v7 = vsel %vm1862_vm11, %v3405_v48, %v3401_v12 }
 0x231   : > { %v4870_v46 = vpop.permute.xlu0 %4869 }
 0x232   : > { %v4942_v49 = vrot.slane %v4870_v46, %v6715_v47 }
 0x234   : > { %v4943_v45 = vsel %vm1862_vm11, %v4942_v49, %v4938_v4 }
 0x236   : > { %v3336_v2 = vpop.permute.xlu1 %3335 }
 0x237   : > { %v3410_v60 = vrot.slane %v3336_v2, %v6683_v34 }
 0x239   : > { %v3411_v8 = vsel %vm1869_vm12, %v3410_v60, %v3406_v7 }
 0x23b   : > { %v4873_v23 = vpop.permute.xlu0 %4872 }
 0x23c   : > { %v4947_v16 = vrot.slane %v4873_v23, %v6683_v34 }
 0x23e   : > { %v4948_v19 = vsel %vm1869_vm12, %v4947_v16, %v4943_v45 }
 0x240   : > { %v3339_v24 = vpop.permute.xlu1 %3338 }
 0x241   : > { %v3415_v5 = vrot.slane %v3339_v24, %v6729_v50 }
 0x243   : > { %v3416_v26 = vsel %vm1876_vm13, %v3415_v5, %v3411_v8 }
 0x246   : > { %v4876_v42 = vpop.permute.xlu0 %4875 }
 0x247   : > { %v4952_v10 = vrot.slane %v4876_v42, %v6729_v50 }
 0x249   : > { %v4953_v50 = vsel %vm1876_vm13, %v4952_v10, %v4948_v19 }
 0x24b   : > { %v3342_v37 = vpop.permute.xlu1 %3341 }
 0x24c   : > { %v3420_v9 = vrot.slane %v3342_v37, %v6691_v28 }
 0x24e   : > { %v3421_v18 = vsel %vm1883_vm14, %v3420_v9, %v3416_v26 }
 0x24f   : > { %v3428_v32 = vrot.slane %v3421_v18, %v5660_v31 }
 0x250   : > { %v4879_v47 = vpop.permute.xlu0 %4878 }
 0x251   : > { %v3435_v17 = vrot.slane %v3428_v32, %v5660_v31  ;;  %v4957_v34 = vrot.slane %v4879_v47, %v6691_v28 }
 0x253   : > { %v3437_v13 = vadd.f32 %v3435_v17, %v1934_v52  ;;  %v4958_v57 = vsel %vm1883_vm14, %v4957_v34, %v4953_v50 }
 0x254   : > { %v4965_v39 = vrot.slane %v4958_v57, %v5660_v31 }
 0x255   : > { %3438 = vst [vmem:[#allocation3] sm:$0x1] %v3437_v13 }
 0x256   : > { %v4972_v33 = vrot.slane %v4965_v39, %v5660_v31 }
 0x258   : > { %v4974_v40 = vadd.f32 %v4972_v33, %v3471_v35 }
 0x25a   : > { %4975 = vst [vmem:[#allocation4] sm:$0x1] %v4974_v40 }
 0x25c   : > { %v4982_v3 = vld [vmem:[#allocation3] sm:$0x1] }
 0x25d   : > { %v4983_v11 = vmul.f32 0.00390625, %v4982_v3 }
 0x25f   : > { %4984 = vst [vmem:[%s6769_s24 + $0x1] sm:$0x1] %v4983_v11 }
 0x261   : > { %v4985_v21 = vld [vmem:[#allocation4] sm:$0x1] }
 0x262   : > { %v4986_v22 = vmul.f32 0.00390625, %v4985_v21 }
 0x264   : > { %4987 = vst [vmem:[%s6769_s24 + $0x2] sm:$0x1] %v4986_v22 }
 0x265 PF: > { %s19_s17 = sadd.s32 1, %s5365_s17   ;;  %s6843_s12 = smov %s5349_s13 }
 0x266   : > { %p16_p9 = scmp.ge.s32.totalorder %s19_s17, 4   ;;  %s6844_s13 = smov %s5353_s14 }
 0x267   : > { %s6845_s14 = smov %s5442_s23  ;;  %s6846_s15 = smov %s5361_s16 }
 0x268   : > { %s6847_s16 = smov %s6849_s19  ;;  %18 = sbr.rel (!%p16_p9) target bundleno = 6 (0x6), region = 104 }
 0x26d   :  { %5013 = vsyncpa [#allocation6], 1 }
 0x26e   :  { %5015 = vsyncpa [#allocation6 + $0x1], 1 }
 0x26f   :  { %5016 = vsyncpa [#allocation8], 1 }
 0x270   :  { %5018 = vsyncpa [#allocation8 + $0x1], 1 }

</bundles_post_ra>
